<compile_context>
chip_gen: v7x
topology: tpu7x:2x2x1
jax: 0.10.0
libtpu: 0.0.40
codegen_flags: <defaults>
</compile_context>

<pallas_src>
import math
import functools

import numpy as np
import jax
import jax.numpy as jnp
from jax.experimental import pallas as pl
from jax.experimental.pallas import tpu as pltpu

EPS = 1e-3                      # LayerNormalization eps (= 0.001)
MATMUL_DTYPE = jnp.bfloat16     # MXU operand dtype (accumulate in f32)


# ----------------------------------------------------------------------------
# In-kernel helpers
# ----------------------------------------------------------------------------
def _layer_norm(z, gain, bias, eps):
    """Custom LayerNormalization: unbiased std (N-1), eps added to sigma."""
    d = z.shape[-1]
    mu = jnp.mean(z, axis=-1, keepdims=True)
    var = jnp.sum((z - mu) ** 2, axis=-1, keepdims=True) * (1.0 / (d - 1))
    inv_sigma = pl.reciprocal(jnp.sqrt(var) + eps, approx=True)   # EUP slot
    return (z - mu) * inv_sigma * gain + bias


def _attend(q, k, v, n_head, dk):
    """Head-batched SDPA.  The 1/sqrt(d_model) scale is folded into W_q."""
    tq, tk = q.shape[0], k.shape[0]
    qh = jnp.transpose(q.reshape(tq, n_head, dk), (1, 0, 2)).astype(MATMUL_DTYPE)
    kh = jnp.transpose(k.reshape(tk, n_head, dk), (1, 0, 2)).astype(MATMUL_DTYPE)
    vh = jnp.transpose(v.reshape(tk, n_head, dk), (1, 0, 2)).astype(MATMUL_DTYPE)
    # scores: (H, Tq, Tk), f32 accumulate
    s = jnp.einsum('hqd,hkd->hqk', qh, kh, preferred_element_type=jnp.float32)
    s = s - jnp.max(s, axis=-1, keepdims=True)
    p = jnp.exp(s)
    p = p * pl.reciprocal(jnp.sum(p, axis=-1, keepdims=True), approx=True)
    # attention dropout: identity (eval mode)
    o = jnp.einsum('hqk,hkd->hqd', p.astype(MATMUL_DTYPE), vh,
                   preferred_element_type=jnp.float32)            # (H, Tq, dk)
    # head-major feature concat, matching the PyTorch permute/view
    return jnp.transpose(o, (1, 0, 2)).reshape(tq, n_head * dk)   # (Tq, H*dk)


# ----------------------------------------------------------------------------
# Fused ViewsAttentionBlock kernel (one grid step == one batch element)
#   self-attn -> (cross-attn + FFN) on context1 & context2 (batched) -> avg
# ----------------------------------------------------------------------------
def _views_block_kernel(x_ref, c1_ref, c2_ref,
                        sa_wq_ref, sa_wk_ref, sa_wv_ref, sa_ga_ref, sa_gb_ref,
                        ca_wq_ref, ca_wk_ref, ca_wv_ref, ca_ga_ref, ca_gb_ref,
                        w1_ref, b1_ref, w2_ref, b2_ref, ff_ga_ref, ff_gb_ref,
                        o_ref, *, n_head, dk, eps):
    T = x_ref.shape[0]
    x = x_ref[...].astype(jnp.float32)                 # (T, D)
    xb = x.astype(MATMUL_DTYPE)

    # ---- self attention (DecoderBlock): three lane-dense projections ----
    q = jnp.dot(xb, sa_wq_ref[...], preferred_element_type=jnp.float32)
    k = jnp.dot(xb, sa_wk_ref[...], preferred_element_type=jnp.float32)
    v = jnp.dot(xb, sa_wv_ref[...], preferred_element_type=jnp.float32)
    y = _layer_norm(_attend(q, k, v, n_head, dk) + x,
                    sa_ga_ref[...], sa_gb_ref[...], eps)

    # ---- shared-weight cross attention on both contexts ----
    # Q projection of y is shared; KV is projected once for the stacked
    # (2T, D) context rows (doubles M on the small matmuls).
    qc = jnp.dot(y.astype(MATMUL_DTYPE), ca_wq_ref[...],
                 preferred_element_type=jnp.float32)
    ctx = jnp.concatenate([c1_ref[...], c2_ref[...]],
                          axis=0).astype(MATMUL_DTYPE)             # (2T, D)
    kc = jnp.dot(ctx, ca_wk_ref[...], preferred_element_type=jnp.float32)
    vc = jnp.dot(ctx, ca_wv_ref[...], preferred_element_type=jnp.float32)
    a1 = _attend(qc, kc[:T], vc[:T], n_head, dk)
    a2 = _attend(qc, kc[T:], vc[T:], n_head, dk)
    z = _layer_norm(jnp.concatenate([a1 + y, a2 + y], axis=0),
                    ca_ga_ref[...], ca_gb_ref[...], eps)           # (2T, D)

    # ---- position-wise FFN runs ONCE on the stacked branch rows ----
    h = jnp.dot(z.astype(MATMUL_DTYPE), w1_ref[...],
                preferred_element_type=jnp.float32) + b1_ref[...]
    h = jnp.maximum(h, 0.0)                                        # ReLU
    f = jnp.dot(h.astype(MATMUL_DTYPE), w2_ref[...],
                preferred_element_type=jnp.float32) + b2_ref[...]
    out = _layer_norm(f + z, ff_ga_ref[...], ff_gb_ref[...], eps)  # (2T, D)

    # average the two cross branches
    o_ref[...] = ((out[:T] + out[T:]) * 0.5).astype(o_ref.dtype)


def views_block_pallas(x, ctx1, ctx2, blk):
    """One ViewsAttentionBlock as a single pallas_call, grid over batch."""
    B, T, D = x.shape
    sa, ca, ff = blk["self_attn"], blk["cross_mha"], blk["cross_ffn"]
    n_head, dk = blk["n_head"], blk["d_k"]

    kernel = functools.partial(_views_block_kernel,
                               n_head=n_head, dk=dk, eps=EPS)

    def per_batch_spec(shape):
        nd = len(shape)
        return pl.BlockSpec((None,) + tuple(shape[1:]),
                            lambda b: (b,) + (0,) * (nd - 1))

    def resident_spec(shape):
        nd = len(shape)
        # constant block index -> fetched once, stays resident across steps
        return pl.BlockSpec(tuple(shape), lambda b: (0,) * nd)

    in_arrays = [
        x, ctx1, ctx2,
        sa["wq"], sa["wk"], sa["wv"], sa["ln_a"], sa["ln_b"],
        ca["wq"], ca["wk"], ca["wv"], ca["ln_a"], ca["ln_b"],
        ff["w1"], ff["b1"], ff["w2"], ff["b2"], ff["ln_a"], ff["ln_b"],
    ]
    in_specs = ([per_batch_spec(x.shape),
                 per_batch_spec(ctx1.shape),
                 per_batch_spec(ctx2.shape)]
                + [resident_spec(a.shape) for a in in_arrays[3:]])

    return pl.pallas_call(
        kernel,
        out_shape=jax.ShapeDtypeStruct((B, T, D), jnp.float32),
        grid=(B,),
        in_specs=in_specs,
        out_specs=pl.BlockSpec((None, T, D), lambda b: (b, 0, 0)),
        compiler_params=pltpu.CompilerParams(
            dimension_semantics=("parallel",)),
    )(*in_arrays)


# ----------------------------------------------------------------------------
# Parameter construction (deterministic, synthetic — no checkpoint loading)
# ----------------------------------------------------------------------------
def position_encoding_table(n_positions, hidden_size):
    pe = np.array(
        [[pos / np.power(10000, 2 * (j // 2) / hidden_size)
          for j in range(hidden_size)]
         if pos != 0 else np.zeros(hidden_size)
         for pos in range(n_positions)])
    pe[1:, 0::2] = np.sin(pe[1:, 0::2])
    pe[1:, 1::2] = np.cos(pe[1:, 1::2])
    return jnp.asarray(pe, jnp.float32)


def _xavier_normal(key, shape):
    # matches torch.nn.init.xavier_normal_ fan computation for 3-D tensors
    fan_in = shape[1] * shape[2]
    fan_out = shape[0] * shape[2]
    std = math.sqrt(2.0 / (fan_in + fan_out))
    return std * jax.random.normal(key, shape, jnp.float32)


def init_mha(key, n_head, input_size, d_k, d_v):
    k1, k2, k3 = jax.random.split(key, 3)

    def fuse(w):   # (H, D, dk) -> (D, H*dk); head h lives at cols [h*dk,(h+1)*dk)
        return jnp.transpose(w, (1, 0, 2)).reshape(input_size, -1)

    scale_q = 1.0 / math.sqrt(input_size)          # temper = d_model**0.5, folded
    wq = fuse(_xavier_normal(k1, (n_head, input_size, d_k))) * scale_q
    wk = fuse(_xavier_normal(k2, (n_head, input_size, d_k)))
    wv = fuse(_xavier_normal(k3, (n_head, input_size, d_v)))
    return {
        "wq": wq.astype(MATMUL_DTYPE),             # bf16 on HBM (halved DMA)
        "wk": wk.astype(MATMUL_DTYPE),
        "wv": wv.astype(MATMUL_DTYPE),
        "ln_a": jnp.ones((1, input_size), jnp.float32),
        "ln_b": jnp.zeros((1, input_size), jnp.float32),
    }


def init_ffn(key, d_hid, d_inner):
    k1, k2, k3, k4 = jax.random.split(key, 4)
    b1 = 1.0 / math.sqrt(d_hid)      # conv1d default-ish bounds
    b2 = 1.0 / math.sqrt(d_inner)
    return {
        "w1": jax.random.uniform(k1, (d_hid, d_inner), jnp.float32,
                                 -b1, b1).astype(MATMUL_DTYPE),
        "b1": jax.random.uniform(k2, (1, d_inner), jnp.float32, -b1, b1),
        "w2": jax.random.uniform(k3, (d_inner, d_hid), jnp.float32,
                                 -b2, b2).astype(MATMUL_DTYPE),
        "b2": jax.random.uniform(k4, (1, d_hid), jnp.float32, -b2, b2),
        "ln_a": jnp.ones((1, d_hid), jnp.float32),
        "ln_b": jnp.zeros((1, d_hid), jnp.float32),
    }


def init_views_block(key, input_size, hidden_size, n_head, inner_hidden_size):
    d_k = hidden_size // n_head
    ks = jax.random.split(key, 3)
    return {
        "n_head": n_head,
        "d_k": d_k,
        "self_attn": init_mha(ks[0], n_head, input_size, d_k, d_k),
        "cross_mha": init_mha(ks[1], n_head, input_size, d_k, d_k),
        "cross_ffn": init_ffn(ks[2], hidden_size, inner_hidden_size),
    }


def init_views_cross_attention(key, input_size, hidden_size, n_heads,
                               inner_hidden_factor=2):
    input_sizes = [hidden_size] * len(n_heads)
    input_sizes[0] = input_size
    layers = []
    for i, n_head in enumerate(n_heads):
        key, kv1, kv2, kv3 = jax.random.split(key, 4)
        inner = hidden_size * inner_hidden_factor
        layers.append({
            "view1": init_views_block(kv1, input_sizes[i], hidden_size, n_head, inner),
            "view2": init_views_block(kv2, input_sizes[i], hidden_size, n_head, inner),
            "view3": init_views_block(kv3, input_sizes[i], hidden_size, n_head, inner),
        })
    return {"layers": layers}


# ----------------------------------------------------------------------------
# Forward pass (mirrors the PyTorch control flow)
# ----------------------------------------------------------------------------
def views_cross_attention_fwd(x1, x2, x3, params, pe_table):
    T = x1.shape[1]
    enc = pe_table[:T]                              # PositionEncoding
    x1, x2, x3 = x1 + enc, x2 + enc, x3 + enc
    for layer in params["layers"]:
        x1 = views_block_pallas(x1, x2, x3, layer["view1"])
        x2 = views_block_pallas(x2, x1, x3, layer["view2"])
        x3 = views_block_pallas(x3, x1, x2, layer["view3"])
    return x1, x2, x3


# ----------------------------------------------------------------------------
# Pure-JAX reference (f32 math on the same bf16-quantized weights)
# ----------------------------------------------------------------------------
def _ref_layer_norm(z, a, b):
    mu = jnp.mean(z, axis=-1, keepdims=True)
    var = jnp.sum((z - mu) ** 2, axis=-1, keepdims=True) / (z.shape[-1] - 1)
    return (z - mu) / (jnp.sqrt(var) + EPS) * a + b


def _ref_mha(q_in, kv_in, mha, n_head, dk):
    # NOTE: 1/sqrt(d_model) is already folded into W_q at init.
    B, Tq, D = q_in.shape
    Tk = kv_in.shape[1]
    wq, wk, wv = (mha["wq"].astype(jnp.float32), mha["wk"].astype(jnp.float32),
                  mha["wv"].astype(jnp.float32))
    q = jnp.einsum('btd,de->bte', q_in, wq).reshape(B, Tq, n_head, dk)
    k = jnp.einsum('btd,de->bte', kv_in, wk).reshape(B, Tk, n_head, dk)
    v = jnp.einsum('btd,de->bte', kv_in, wv).reshape(B, Tk, n_head, dk)
    s = jnp.einsum('bqhd,bkhd->bhqk', q, k)
    p = jax.nn.softmax(s, axis=-1)
    o = jnp.einsum('bhqk,bkhd->bqhd', p, v).reshape(B, Tq, D)
    return _ref_layer_norm(o + q_in, mha["ln_a"], mha["ln_b"])


def _ref_ffn(x, ff):
    h = jax.nn.relu(jnp.einsum('btd,de->bte', x, ff["w1"].astype(jnp.float32))
                    + ff["b1"])
    y = jnp.einsum('bte,ed->btd', h, ff["w2"].astype(jnp.float32)) + ff["b2"]
    return _ref_layer_norm(y + x, ff["ln_a"], ff["ln_b"])


def _ref_block(x, c1, c2, blk):
    n_head, dk = blk["n_head"], blk["d_k"]
    y = _ref_mha(x, x, blk["self_attn"], n_head, dk)
    z1 = _ref_ffn(_ref_mha(y, c1, blk["cross_mha"], n_head, dk), blk["cross_ffn"])
    z2 = _ref_ffn(_ref_mha(y, c2, blk["cross_mha"], n_head, dk), blk["cross_ffn"])
    return (z1 + z2) * 0.5


def views_cross_attention_ref(x1, x2, x3, params, pe_table):
    T = x1.shape[1]
    enc = pe_table[:T]
    x1, x2, x3 = x1 + enc, x2 + enc, x3 + enc
    for layer in params["layers"]:
        x1 = _ref_block(x1, x2, x3, layer["view1"])
        x2 = _ref_block(x2, x1, x3, layer["view2"])
        x3 = _ref_block(x3, x1, x2, layer["view3"])
    return x1, x2, x3


# ----------------------------------------------------------------------------
if __name__ == "__main__":
    B, T = 2, 8
    input_size = hidden_size = 32       # residual path requires input == hidden
    sequence_size = 16                  # n_positions for the encoding table
    n_heads = (4, 4)                    # two stacked layers, 4 heads each

    key = jax.random.PRNGKey(0)
    kx1, kx2, kx3, kp = jax.random.split(key, 4)
    x1 = jax.random.normal(kx1, (B, T, input_size), jnp.float32)
    x2 = jax.random.normal(kx2, (B, T, input_size), jnp.float32)
    x3 = jax.random.normal(kx3, (B, T, input_size), jnp.float32)

    params = init_views_cross_attention(kp, input_size, hidden_size, n_heads,
                                        inner_hidden_factor=2)
    pe_table = position_encoding_table(sequence_size, hidden_size)

    # TODO(synk): dropout layers (attention / projection / FFN) are stochastic;
    # implemented as identity (eval / inference mode).
    o1, o2, o3 = views_cross_attention_fwd(x1, x2, x3, params, pe_table)
    jax.block_until_ready((o1, o2, o3))

    assert o1.shape == (B, T, hidden_size)
    assert o2.shape == (B, T, hidden_size)
    assert o3.shape == (B, T, hidden_size)
    assert bool(jnp.all(jnp.isfinite(o1)) & jnp.all(jnp.isfinite(o2))
                & jnp.all(jnp.isfinite(o3)))

    # loose check vs f32 reference (kernel uses bf16 matmuls + approx recip)
    r1, r2, r3 = views_cross_attention_ref(x1, x2, x3, params, pe_table)
    rel = max(
        float(jnp.linalg.norm(o1 - r1) / (jnp.linalg.norm(r1) + 1e-6)),
        float(jnp.linalg.norm(o2 - r2) / (jnp.linalg.norm(r2) + 1e-6)),
        float(jnp.linalg.norm(o3 - r3) / (jnp.linalg.norm(r3) + 1e-6)),
    )
    assert rel < 5e-2, f"kernel diverges from reference: rel={rel}"

    print("KERNEL_OK")
</pallas_src>

<mosaic_0001>
module attributes {stable_mosaic.version = 11 : i64} {
  func.func @_views_block_kernel(%arg0: i32, %arg1: memref<1x8x32xf32, #tpu.memory_space<vmem>>, %arg2: memref<1x8x32xf32, #tpu.memory_space<vmem>>, %arg3: memref<1x8x32xf32, #tpu.memory_space<vmem>>, %arg4: memref<32x32xbf16, #tpu.memory_space<vmem>>, %arg5: memref<32x32xbf16, #tpu.memory_space<vmem>>, %arg6: memref<32x32xbf16, #tpu.memory_space<vmem>>, %arg7: memref<1x32xf32, #tpu.memory_space<vmem>>, %arg8: memref<1x32xf32, #tpu.memory_space<vmem>>, %arg9: memref<32x32xbf16, #tpu.memory_space<vmem>>, %arg10: memref<32x32xbf16, #tpu.memory_space<vmem>>, %arg11: memref<32x32xbf16, #tpu.memory_space<vmem>>, %arg12: memref<1x32xf32, #tpu.memory_space<vmem>>, %arg13: memref<1x32xf32, #tpu.memory_space<vmem>>, %arg14: memref<32x64xbf16, #tpu.memory_space<vmem>>, %arg15: memref<1x64xf32, #tpu.memory_space<vmem>>, %arg16: memref<64x32xbf16, #tpu.memory_space<vmem>>, %arg17: memref<1x32xf32, #tpu.memory_space<vmem>>, %arg18: memref<1x32xf32, #tpu.memory_space<vmem>>, %arg19: memref<1x32xf32, #tpu.memory_space<vmem>>, %arg20: memref<1x8x32xf32, #tpu.memory_space<vmem>>) attributes {dimension_semantics = [#tpu.dimension_semantics<parallel>], iteration_bounds = array<i64: 2>, scalar_prefetch = 0 : i64, scratch_operands = 0 : i64, tpu.core_type = #tpu.core_type<tc>, window_params = [{transform_indices = @transform_0, window_bounds = array<i64: 1, 8, 32>}, {transform_indices = @transform_1, window_bounds = array<i64: 1, 8, 32>}, {transform_indices = @transform_2, window_bounds = array<i64: 1, 8, 32>}, {pipeline_mode = #tpu.pipeline_mode<synchronous>, transform_indices = @transform_3, window_bounds = array<i64: 32, 32>}, {pipeline_mode = #tpu.pipeline_mode<synchronous>, transform_indices = @transform_4, window_bounds = array<i64: 32, 32>}, {pipeline_mode = #tpu.pipeline_mode<synchronous>, transform_indices = @transform_5, window_bounds = array<i64: 32, 32>}, {pipeline_mode = #tpu.pipeline_mode<synchronous>, transform_indices = @transform_6, window_bounds = array<i64: 1, 32>}, {pipeline_mode = #tpu.pipeline_mode<synchronous>, transform_indices = @transform_7, window_bounds = array<i64: 1, 32>}, {pipeline_mode = #tpu.pipeline_mode<synchronous>, transform_indices = @transform_8, window_bounds = array<i64: 32, 32>}, {pipeline_mode = #tpu.pipeline_mode<synchronous>, transform_indices = @transform_9, window_bounds = array<i64: 32, 32>}, {pipeline_mode = #tpu.pipeline_mode<synchronous>, transform_indices = @transform_10, window_bounds = array<i64: 32, 32>}, {pipeline_mode = #tpu.pipeline_mode<synchronous>, transform_indices = @transform_11, window_bounds = array<i64: 1, 32>}, {pipeline_mode = #tpu.pipeline_mode<synchronous>, transform_indices = @transform_12, window_bounds = array<i64: 1, 32>}, {pipeline_mode = #tpu.pipeline_mode<synchronous>, transform_indices = @transform_13, window_bounds = array<i64: 32, 64>}, {pipeline_mode = #tpu.pipeline_mode<synchronous>, transform_indices = @transform_14, window_bounds = array<i64: 1, 64>}, {pipeline_mode = #tpu.pipeline_mode<synchronous>, transform_indices = @transform_15, window_bounds = array<i64: 64, 32>}, {pipeline_mode = #tpu.pipeline_mode<synchronous>, transform_indices = @transform_16, window_bounds = array<i64: 1, 32>}, {pipeline_mode = #tpu.pipeline_mode<synchronous>, transform_indices = @transform_17, window_bounds = array<i64: 1, 32>}, {pipeline_mode = #tpu.pipeline_mode<synchronous>, transform_indices = @transform_18, window_bounds = array<i64: 1, 32>}, {transform_indices = @transform_19, window_bounds = array<i64: 1, 8, 32>}]} {
    %c0 = arith.constant 0 : index
    %c0_0 = arith.constant 0 : index
    %c0_1 = arith.constant 0 : index
    %0 = vector.load %arg1[%c0, %c0_0, %c0_1] : memref<1x8x32xf32, #tpu.memory_space<vmem>>, vector<1x8x32xf32>
    %1 = vector.shape_cast %0 : vector<1x8x32xf32> to vector<8x32xf32>
    %2 = arith.truncf %1 : vector<8x32xf32> to vector<8x32xbf16>
    %c0_2 = arith.constant 0 : index
    %c0_3 = arith.constant 0 : index
    %3 = vector.load %arg4[%c0_2, %c0_3] : memref<32x32xbf16, #tpu.memory_space<vmem>>, vector<32x32xbf16>
    %cst = arith.constant dense<0.000000e+00> : vector<8x32xf32>
    %4 = tpu.matmul %2, %3, %cst {dimension_numbers = #tpu.dot_dimension_numbers<[1], [0], [0], [1], [0, 0, 1, 1], [], []>} : vector<8x32xbf16>, vector<32x32xbf16>, vector<8x32xf32> -> vector<8x32xf32>
    %c0_4 = arith.constant 0 : index
    %c0_5 = arith.constant 0 : index
    %5 = vector.load %arg5[%c0_4, %c0_5] : memref<32x32xbf16, #tpu.memory_space<vmem>>, vector<32x32xbf16>
    %cst_6 = arith.constant dense<0.000000e+00> : vector<8x32xf32>
    %6 = tpu.matmul %2, %5, %cst_6 {dimension_numbers = #tpu.dot_dimension_numbers<[1], [0], [0], [1], [0, 0, 1, 1], [], []>} : vector<8x32xbf16>, vector<32x32xbf16>, vector<8x32xf32> -> vector<8x32xf32>
    %c0_7 = arith.constant 0 : index
    %c0_8 = arith.constant 0 : index
    %7 = vector.load %arg6[%c0_7, %c0_8] : memref<32x32xbf16, #tpu.memory_space<vmem>>, vector<32x32xbf16>
    %cst_9 = arith.constant dense<0.000000e+00> : vector<8x32xf32>
    %8 = tpu.matmul %2, %7, %cst_9 {dimension_numbers = #tpu.dot_dimension_numbers<[1], [0], [0], [1], [0, 0, 1, 1], [], []>} : vector<8x32xbf16>, vector<32x32xbf16>, vector<8x32xf32> -> vector<8x32xf32>
    %9 = vector.shape_cast %4 : vector<8x32xf32> to vector<8x4x8xf32>
    %10 = tpu.transpose %9, [1, 0, 2] : vector<8x4x8xf32> -> vector<4x8x8xf32>
    %11 = arith.truncf %10 : vector<4x8x8xf32> to vector<4x8x8xbf16>
    %12 = vector.shape_cast %6 : vector<8x32xf32> to vector<8x4x8xf32>
    %13 = tpu.transpose %12, [1, 0, 2] : vector<8x4x8xf32> -> vector<4x8x8xf32>
    %14 = arith.truncf %13 : vector<4x8x8xf32> to vector<4x8x8xbf16>
    %15 = vector.shape_cast %8 : vector<8x32xf32> to vector<8x4x8xf32>
    %16 = tpu.transpose %15, [1, 0, 2] : vector<8x4x8xf32> -> vector<4x8x8xf32>
    %17 = arith.truncf %16 : vector<4x8x8xf32> to vector<4x8x8xbf16>
    "tpu.trace_start"() <{level = 10 : i32, message = "hqd,hkd->hqk"}> : () -> ()
    %cst_10 = arith.constant dense<0.000000e+00> : vector<4x8x8xf32>
    %18 = tpu.matmul %11, %14, %cst_10 {dimension_numbers = #tpu.dot_dimension_numbers<[2], [2], [1], [1], [0, 0, 0, 1, 1, 1], [0], [0]>} : vector<4x8x8xbf16>, vector<4x8x8xbf16>, vector<4x8x8xf32> -> vector<4x8x8xf32>
    "tpu.trace_stop"() : () -> ()
    %cst_11 = arith.constant dense<0xFF800000> : vector<4x8xf32>
    %19 = vector.multi_reduction <maximumf>, %18, %cst_11 [2] : vector<4x8x8xf32> to vector<4x8xf32>
    %20 = vector.shape_cast %19 : vector<4x8xf32> to vector<4x8x1xf32>
    %21 = vector.broadcast %20 : vector<4x8x1xf32> to vector<4x8x8xf32>
    %22 = arith.subf %18, %21 : vector<4x8x8xf32>
    %23 = math.exp %22 : vector<4x8x8xf32>
    %cst_12 = arith.constant dense<0.000000e+00> : vector<4x8xf32>
    %24 = vector.multi_reduction <add>, %23, %cst_12 [2] : vector<4x8x8xf32> to vector<4x8xf32>
    %25 = vector.shape_cast %24 : vector<4x8xf32> to vector<4x8x1xf32>
    %26 = tpu.reciprocal %25 {approx = true} : vector<4x8x1xf32> -> vector<4x8x1xf32>
    %27 = vector.broadcast %26 : vector<4x8x1xf32> to vector<4x8x8xf32>
    %28 = arith.mulf %23, %27 : vector<4x8x8xf32>
    %29 = arith.truncf %28 : vector<4x8x8xf32> to vector<4x8x8xbf16>
    "tpu.trace_start"() <{level = 10 : i32, message = "hqk,hkd->hqd"}> : () -> ()
    %cst_13 = arith.constant dense<0.000000e+00> : vector<4x8x8xf32>
    %30 = tpu.matmul %29, %17, %cst_13 {dimension_numbers = #tpu.dot_dimension_numbers<[2], [1], [1], [2], [0, 0, 0, 1, 1, 2], [0], [0]>} : vector<4x8x8xbf16>, vector<4x8x8xbf16>, vector<4x8x8xf32> -> vector<4x8x8xf32>
    "tpu.trace_stop"() : () -> ()
    %31 = tpu.transpose %30, [1, 0, 2] : vector<4x8x8xf32> -> vector<8x4x8xf32>
    %32 = vector.shape_cast %31 : vector<8x4x8xf32> to vector<8x32xf32>
    %33 = arith.addf %32, %1 : vector<8x32xf32>
    %c0_14 = arith.constant 0 : index
    %c0_15 = arith.constant 0 : index
    %34 = vector.load %arg7[%c0_14, %c0_15] : memref<1x32xf32, #tpu.memory_space<vmem>>, vector<1x32xf32>
    %c0_16 = arith.constant 0 : index
    %c0_17 = arith.constant 0 : index
    %35 = vector.load %arg8[%c0_16, %c0_17] : memref<1x32xf32, #tpu.memory_space<vmem>>, vector<1x32xf32>
    %cst_18 = arith.constant dense<0.000000e+00> : vector<8xf32>
    %36 = vector.multi_reduction <add>, %33, %cst_18 [1] : vector<8x32xf32> to vector<8xf32>
    %37 = vector.shape_cast %36 : vector<8xf32> to vector<8x1xf32>
    %cst_19 = arith.constant 3.200000e+01 : f32
    %38 = vector.broadcast %cst_19 : f32 to vector<8x1xf32>
    %39 = arith.divf %37, %38 : vector<8x1xf32>
    %40 = vector.broadcast %39 : vector<8x1xf32> to vector<8x32xf32>
    %41 = arith.subf %33, %40 : vector<8x32xf32>
    %42 = arith.mulf %41, %41 : vector<8x32xf32>
    %cst_20 = arith.constant dense<0.000000e+00> : vector<8xf32>
    %43 = vector.multi_reduction <add>, %42, %cst_20 [1] : vector<8x32xf32> to vector<8xf32>
    %44 = vector.shape_cast %43 : vector<8xf32> to vector<8x1xf32>
    %cst_21 = arith.constant 0.0322580636 : f32
    %45 = vector.broadcast %cst_21 : f32 to vector<8x1xf32>
    %46 = arith.mulf %44, %45 : vector<8x1xf32>
    %47 = math.sqrt %46 : vector<8x1xf32>
    %cst_22 = arith.constant 1.000000e-03 : f32
    %48 = vector.broadcast %cst_22 : f32 to vector<8x1xf32>
    %49 = arith.addf %47, %48 : vector<8x1xf32>
    %50 = tpu.reciprocal %49 {approx = true} : vector<8x1xf32> -> vector<8x1xf32>
    %51 = vector.broadcast %39 : vector<8x1xf32> to vector<8x32xf32>
    %52 = arith.subf %33, %51 : vector<8x32xf32>
    %53 = vector.broadcast %50 : vector<8x1xf32> to vector<8x32xf32>
    %54 = arith.mulf %52, %53 : vector<8x32xf32>
    %55 = vector.broadcast %34 : vector<1x32xf32> to vector<8x32xf32>
    %56 = arith.mulf %54, %55 : vector<8x32xf32>
    %57 = vector.broadcast %35 : vector<1x32xf32> to vector<8x32xf32>
    %58 = arith.addf %56, %57 : vector<8x32xf32>
    %59 = arith.truncf %58 : vector<8x32xf32> to vector<8x32xbf16>
    %c0_23 = arith.constant 0 : index
    %c0_24 = arith.constant 0 : index
    %60 = vector.load %arg9[%c0_23, %c0_24] : memref<32x32xbf16, #tpu.memory_space<vmem>>, vector<32x32xbf16>
    %cst_25 = arith.constant dense<0.000000e+00> : vector<8x32xf32>
    %61 = tpu.matmul %59, %60, %cst_25 {dimension_numbers = #tpu.dot_dimension_numbers<[1], [0], [0], [1], [0, 0, 1, 1], [], []>} : vector<8x32xbf16>, vector<32x32xbf16>, vector<8x32xf32> -> vector<8x32xf32>
    %c0_26 = arith.constant 0 : index
    %c0_27 = arith.constant 0 : index
    %c0_28 = arith.constant 0 : index
    %62 = vector.load %arg2[%c0_26, %c0_27, %c0_28] : memref<1x8x32xf32, #tpu.memory_space<vmem>>, vector<1x8x32xf32>
    %63 = vector.shape_cast %62 : vector<1x8x32xf32> to vector<8x32xf32>
    %c0_29 = arith.constant 0 : index
    %c0_30 = arith.constant 0 : index
    %c0_31 = arith.constant 0 : index
    %64 = vector.load %arg3[%c0_29, %c0_30, %c0_31] : memref<1x8x32xf32, #tpu.memory_space<vmem>>, vector<1x8x32xf32>
    %65 = vector.shape_cast %64 : vector<1x8x32xf32> to vector<8x32xf32>
    %66 = tpu.concatenate %63, %65 in 0 : vector<8x32xf32>, vector<8x32xf32> -> vector<16x32xf32>
    %67 = arith.truncf %66 : vector<16x32xf32> to vector<16x32xbf16>
    %c0_32 = arith.constant 0 : index
    %c0_33 = arith.constant 0 : index
    %68 = vector.load %arg10[%c0_32, %c0_33] : memref<32x32xbf16, #tpu.memory_space<vmem>>, vector<32x32xbf16>
    %cst_34 = arith.constant dense<0.000000e+00> : vector<16x32xf32>
    %69 = tpu.matmul %67, %68, %cst_34 {dimension_numbers = #tpu.dot_dimension_numbers<[1], [0], [0], [1], [0, 0, 1, 1], [], []>} : vector<16x32xbf16>, vector<32x32xbf16>, vector<16x32xf32> -> vector<16x32xf32>
    %c0_35 = arith.constant 0 : index
    %c0_36 = arith.constant 0 : index
    %70 = vector.load %arg11[%c0_35, %c0_36] : memref<32x32xbf16, #tpu.memory_space<vmem>>, vector<32x32xbf16>
    %cst_37 = arith.constant dense<0.000000e+00> : vector<16x32xf32>
    %71 = tpu.matmul %67, %70, %cst_37 {dimension_numbers = #tpu.dot_dimension_numbers<[1], [0], [0], [1], [0, 0, 1, 1], [], []>} : vector<16x32xbf16>, vector<32x32xbf16>, vector<16x32xf32> -> vector<16x32xf32>
    %72 = vector.extract_strided_slice %69 {offsets = [0, 0], sizes = [8, 32], strides = [1, 1]} : vector<16x32xf32> to vector<8x32xf32>
    %73 = vector.extract_strided_slice %71 {offsets = [0, 0], sizes = [8, 32], strides = [1, 1]} : vector<16x32xf32> to vector<8x32xf32>
    %74 = vector.shape_cast %61 : vector<8x32xf32> to vector<8x4x8xf32>
    %75 = tpu.transpose %74, [1, 0, 2] : vector<8x4x8xf32> -> vector<4x8x8xf32>
    %76 = arith.truncf %75 : vector<4x8x8xf32> to vector<4x8x8xbf16>
    %77 = vector.shape_cast %72 : vector<8x32xf32> to vector<8x4x8xf32>
    %78 = tpu.transpose %77, [1, 0, 2] : vector<8x4x8xf32> -> vector<4x8x8xf32>
    %79 = arith.truncf %78 : vector<4x8x8xf32> to vector<4x8x8xbf16>
    %80 = vector.shape_cast %73 : vector<8x32xf32> to vector<8x4x8xf32>
    %81 = tpu.transpose %80, [1, 0, 2] : vector<8x4x8xf32> -> vector<4x8x8xf32>
    %82 = arith.truncf %81 : vector<4x8x8xf32> to vector<4x8x8xbf16>
    "tpu.trace_start"() <{level = 10 : i32, message = "hqd,hkd->hqk"}> : () -> ()
    %cst_38 = arith.constant dense<0.000000e+00> : vector<4x8x8xf32>
    %83 = tpu.matmul %76, %79, %cst_38 {dimension_numbers = #tpu.dot_dimension_numbers<[2], [2], [1], [1], [0, 0, 0, 1, 1, 1], [0], [0]>} : vector<4x8x8xbf16>, vector<4x8x8xbf16>, vector<4x8x8xf32> -> vector<4x8x8xf32>
    "tpu.trace_stop"() : () -> ()
    %cst_39 = arith.constant dense<0xFF800000> : vector<4x8xf32>
    %84 = vector.multi_reduction <maximumf>, %83, %cst_39 [2] : vector<4x8x8xf32> to vector<4x8xf32>
    %85 = vector.shape_cast %84 : vector<4x8xf32> to vector<4x8x1xf32>
    %86 = vector.broadcast %85 : vector<4x8x1xf32> to vector<4x8x8xf32>
    %87 = arith.subf %83, %86 : vector<4x8x8xf32>
    %88 = math.exp %87 : vector<4x8x8xf32>
    %cst_40 = arith.constant dense<0.000000e+00> : vector<4x8xf32>
    %89 = vector.multi_reduction <add>, %88, %cst_40 [2] : vector<4x8x8xf32> to vector<4x8xf32>
    %90 = vector.shape_cast %89 : vector<4x8xf32> to vector<4x8x1xf32>
    %91 = tpu.reciprocal %90 {approx = true} : vector<4x8x1xf32> -> vector<4x8x1xf32>
    %92 = vector.broadcast %91 : vector<4x8x1xf32> to vector<4x8x8xf32>
    %93 = arith.mulf %88, %92 : vector<4x8x8xf32>
    %94 = arith.truncf %93 : vector<4x8x8xf32> to vector<4x8x8xbf16>
    "tpu.trace_start"() <{level = 10 : i32, message = "hqk,hkd->hqd"}> : () -> ()
    %cst_41 = arith.constant dense<0.000000e+00> : vector<4x8x8xf32>
    %95 = tpu.matmul %94, %82, %cst_41 {dimension_numbers = #tpu.dot_dimension_numbers<[2], [1], [1], [2], [0, 0, 0, 1, 1, 2], [0], [0]>} : vector<4x8x8xbf16>, vector<4x8x8xbf16>, vector<4x8x8xf32> -> vector<4x8x8xf32>
    "tpu.trace_stop"() : () -> ()
    %96 = tpu.transpose %95, [1, 0, 2] : vector<4x8x8xf32> -> vector<8x4x8xf32>
    %97 = vector.shape_cast %96 : vector<8x4x8xf32> to vector<8x32xf32>
    %98 = vector.extract_strided_slice %69 {offsets = [8, 0], sizes = [8, 32], strides = [1, 1]} : vector<16x32xf32> to vector<8x32xf32>
    %99 = vector.extract_strided_slice %71 {offsets = [8, 0], sizes = [8, 32], strides = [1, 1]} : vector<16x32xf32> to vector<8x32xf32>
    %100 = vector.shape_cast %61 : vector<8x32xf32> to vector<8x4x8xf32>
    %101 = tpu.transpose %100, [1, 0, 2] : vector<8x4x8xf32> -> vector<4x8x8xf32>
    %102 = arith.truncf %101 : vector<4x8x8xf32> to vector<4x8x8xbf16>
    %103 = vector.shape_cast %98 : vector<8x32xf32> to vector<8x4x8xf32>
    %104 = tpu.transpose %103, [1, 0, 2] : vector<8x4x8xf32> -> vector<4x8x8xf32>
    %105 = arith.truncf %104 : vector<4x8x8xf32> to vector<4x8x8xbf16>
    %106 = vector.shape_cast %99 : vector<8x32xf32> to vector<8x4x8xf32>
    %107 = tpu.transpose %106, [1, 0, 2] : vector<8x4x8xf32> -> vector<4x8x8xf32>
    %108 = arith.truncf %107 : vector<4x8x8xf32> to vector<4x8x8xbf16>
    "tpu.trace_start"() <{level = 10 : i32, message = "hqd,hkd->hqk"}> : () -> ()
    %cst_42 = arith.constant dense<0.000000e+00> : vector<4x8x8xf32>
    %109 = tpu.matmul %102, %105, %cst_42 {dimension_numbers = #tpu.dot_dimension_numbers<[2], [2], [1], [1], [0, 0, 0, 1, 1, 1], [0], [0]>} : vector<4x8x8xbf16>, vector<4x8x8xbf16>, vector<4x8x8xf32> -> vector<4x8x8xf32>
    "tpu.trace_stop"() : () -> ()
    %cst_43 = arith.constant dense<0xFF800000> : vector<4x8xf32>
    %110 = vector.multi_reduction <maximumf>, %109, %cst_43 [2] : vector<4x8x8xf32> to vector<4x8xf32>
    %111 = vector.shape_cast %110 : vector<4x8xf32> to vector<4x8x1xf32>
    %112 = vector.broadcast %111 : vector<4x8x1xf32> to vector<4x8x8xf32>
    %113 = arith.subf %109, %112 : vector<4x8x8xf32>
    %114 = math.exp %113 : vector<4x8x8xf32>
    %cst_44 = arith.constant dense<0.000000e+00> : vector<4x8xf32>
    %115 = vector.multi_reduction <add>, %114, %cst_44 [2] : vector<4x8x8xf32> to vector<4x8xf32>
    %116 = vector.shape_cast %115 : vector<4x8xf32> to vector<4x8x1xf32>
    %117 = tpu.reciprocal %116 {approx = true} : vector<4x8x1xf32> -> vector<4x8x1xf32>
    %118 = vector.broadcast %117 : vector<4x8x1xf32> to vector<4x8x8xf32>
    %119 = arith.mulf %114, %118 : vector<4x8x8xf32>
    %120 = arith.truncf %119 : vector<4x8x8xf32> to vector<4x8x8xbf16>
    "tpu.trace_start"() <{level = 10 : i32, message = "hqk,hkd->hqd"}> : () -> ()
    %cst_45 = arith.constant dense<0.000000e+00> : vector<4x8x8xf32>
    %121 = tpu.matmul %120, %108, %cst_45 {dimension_numbers = #tpu.dot_dimension_numbers<[2], [1], [1], [2], [0, 0, 0, 1, 1, 2], [0], [0]>} : vector<4x8x8xbf16>, vector<4x8x8xbf16>, vector<4x8x8xf32> -> vector<4x8x8xf32>
    "tpu.trace_stop"() : () -> ()
    %122 = tpu.transpose %121, [1, 0, 2] : vector<4x8x8xf32> -> vector<8x4x8xf32>
    %123 = vector.shape_cast %122 : vector<8x4x8xf32> to vector<8x32xf32>
    %124 = arith.addf %97, %58 : vector<8x32xf32>
    %125 = arith.addf %123, %58 : vector<8x32xf32>
    %126 = tpu.concatenate %124, %125 in 0 : vector<8x32xf32>, vector<8x32xf32> -> vector<16x32xf32>
    %c0_46 = arith.constant 0 : index
    %c0_47 = arith.constant 0 : index
    %127 = vector.load %arg12[%c0_46, %c0_47] : memref<1x32xf32, #tpu.memory_space<vmem>>, vector<1x32xf32>
    %c0_48 = arith.constant 0 : index
    %c0_49 = arith.constant 0 : index
    %128 = vector.load %arg13[%c0_48, %c0_49] : memref<1x32xf32, #tpu.memory_space<vmem>>, vector<1x32xf32>
    %cst_50 = arith.constant dense<0.000000e+00> : vector<16xf32>
    %129 = vector.multi_reduction <add>, %126, %cst_50 [1] : vector<16x32xf32> to vector<16xf32>
    %130 = vector.shape_cast %129 : vector<16xf32> to vector<16x1xf32>
    %cst_51 = arith.constant 3.200000e+01 : f32
    %131 = vector.broadcast %cst_51 : f32 to vector<16x1xf32>
    %132 = arith.divf %130, %131 : vector<16x1xf32>
    %133 = vector.broadcast %132 : vector<16x1xf32> to vector<16x32xf32>
    %134 = arith.subf %126, %133 : vector<16x32xf32>
    %135 = arith.mulf %134, %134 : vector<16x32xf32>
    %cst_52 = arith.constant dense<0.000000e+00> : vector<16xf32>
    %136 = vector.multi_reduction <add>, %135, %cst_52 [1] : vector<16x32xf32> to vector<16xf32>
    %137 = vector.shape_cast %136 : vector<16xf32> to vector<16x1xf32>
    %cst_53 = arith.constant 0.0322580636 : f32
    %138 = vector.broadcast %cst_53 : f32 to vector<16x1xf32>
    %139 = arith.mulf %137, %138 : vector<16x1xf32>
    %140 = math.sqrt %139 : vector<16x1xf32>
    %cst_54 = arith.constant 1.000000e-03 : f32
    %141 = vector.broadcast %cst_54 : f32 to vector<16x1xf32>
    %142 = arith.addf %140, %141 : vector<16x1xf32>
    %143 = tpu.reciprocal %142 {approx = true} : vector<16x1xf32> -> vector<16x1xf32>
    %144 = vector.broadcast %132 : vector<16x1xf32> to vector<16x32xf32>
    %145 = arith.subf %126, %144 : vector<16x32xf32>
    %146 = vector.broadcast %143 : vector<16x1xf32> to vector<16x32xf32>
    %147 = arith.mulf %145, %146 : vector<16x32xf32>
    %148 = vector.broadcast %127 : vector<1x32xf32> to vector<16x32xf32>
    %149 = arith.mulf %147, %148 : vector<16x32xf32>
    %150 = vector.broadcast %128 : vector<1x32xf32> to vector<16x32xf32>
    %151 = arith.addf %149, %150 : vector<16x32xf32>
    %152 = arith.truncf %151 : vector<16x32xf32> to vector<16x32xbf16>
    %c0_55 = arith.constant 0 : index
    %c0_56 = arith.constant 0 : index
    %153 = vector.load %arg14[%c0_55, %c0_56] : memref<32x64xbf16, #tpu.memory_space<vmem>>, vector<32x64xbf16>
    %cst_57 = arith.constant dense<0.000000e+00> : vector<16x64xf32>
    %154 = tpu.matmul %152, %153, %cst_57 {dimension_numbers = #tpu.dot_dimension_numbers<[1], [0], [0], [1], [0, 0, 1, 1], [], []>} : vector<16x32xbf16>, vector<32x64xbf16>, vector<16x64xf32> -> vector<16x64xf32>
    %c0_58 = arith.constant 0 : index
    %c0_59 = arith.constant 0 : index
    %155 = vector.load %arg15[%c0_58, %c0_59] : memref<1x64xf32, #tpu.memory_space<vmem>>, vector<1x64xf32>
    %156 = vector.broadcast %155 : vector<1x64xf32> to vector<16x64xf32>
    %157 = arith.addf %154, %156 : vector<16x64xf32>
    %cst_60 = arith.constant 0.000000e+00 : f32
    %158 = vector.broadcast %cst_60 : f32 to vector<16x64xf32>
    %159 = arith.maximumf %157, %158 : vector<16x64xf32>
    %160 = arith.truncf %159 : vector<16x64xf32> to vector<16x64xbf16>
    %c0_61 = arith.constant 0 : index
    %c0_62 = arith.constant 0 : index
    %161 = vector.load %arg16[%c0_61, %c0_62] : memref<64x32xbf16, #tpu.memory_space<vmem>>, vector<64x32xbf16>
    %cst_63 = arith.constant dense<0.000000e+00> : vector<16x32xf32>
    %162 = tpu.matmul %160, %161, %cst_63 {dimension_numbers = #tpu.dot_dimension_numbers<[1], [0], [0], [1], [0, 0, 1, 1], [], []>} : vector<16x64xbf16>, vector<64x32xbf16>, vector<16x32xf32> -> vector<16x32xf32>
    %c0_64 = arith.constant 0 : index
    %c0_65 = arith.constant 0 : index
    %163 = vector.load %arg17[%c0_64, %c0_65] : memref<1x32xf32, #tpu.memory_space<vmem>>, vector<1x32xf32>
    %164 = vector.broadcast %163 : vector<1x32xf32> to vector<16x32xf32>
    %165 = arith.addf %162, %164 : vector<16x32xf32>
    %166 = arith.addf %165, %151 : vector<16x32xf32>
    %c0_66 = arith.constant 0 : index
    %c0_67 = arith.constant 0 : index
    %167 = vector.load %arg18[%c0_66, %c0_67] : memref<1x32xf32, #tpu.memory_space<vmem>>, vector<1x32xf32>
    %c0_68 = arith.constant 0 : index
    %c0_69 = arith.constant 0 : index
    %168 = vector.load %arg19[%c0_68, %c0_69] : memref<1x32xf32, #tpu.memory_space<vmem>>, vector<1x32xf32>
    %cst_70 = arith.constant dense<0.000000e+00> : vector<16xf32>
    %169 = vector.multi_reduction <add>, %166, %cst_70 [1] : vector<16x32xf32> to vector<16xf32>
    %170 = vector.shape_cast %169 : vector<16xf32> to vector<16x1xf32>
    %cst_71 = arith.constant 3.200000e+01 : f32
    %171 = vector.broadcast %cst_71 : f32 to vector<16x1xf32>
    %172 = arith.divf %170, %171 : vector<16x1xf32>
    %173 = vector.broadcast %172 : vector<16x1xf32> to vector<16x32xf32>
    %174 = arith.subf %166, %173 : vector<16x32xf32>
    %175 = arith.mulf %174, %174 : vector<16x32xf32>
    %cst_72 = arith.constant dense<0.000000e+00> : vector<16xf32>
    %176 = vector.multi_reduction <add>, %175, %cst_72 [1] : vector<16x32xf32> to vector<16xf32>
    %177 = vector.shape_cast %176 : vector<16xf32> to vector<16x1xf32>
    %cst_73 = arith.constant 0.0322580636 : f32
    %178 = vector.broadcast %cst_73 : f32 to vector<16x1xf32>
    %179 = arith.mulf %177, %178 : vector<16x1xf32>
    %180 = math.sqrt %179 : vector<16x1xf32>
    %cst_74 = arith.constant 1.000000e-03 : f32
    %181 = vector.broadcast %cst_74 : f32 to vector<16x1xf32>
    %182 = arith.addf %180, %181 : vector<16x1xf32>
    %183 = tpu.reciprocal %182 {approx = true} : vector<16x1xf32> -> vector<16x1xf32>
    %184 = vector.broadcast %172 : vector<16x1xf32> to vector<16x32xf32>
    %185 = arith.subf %166, %184 : vector<16x32xf32>
    %186 = vector.broadcast %183 : vector<16x1xf32> to vector<16x32xf32>
    %187 = arith.mulf %185, %186 : vector<16x32xf32>
    %188 = vector.broadcast %167 : vector<1x32xf32> to vector<16x32xf32>
    %189 = arith.mulf %187, %188 : vector<16x32xf32>
    %190 = vector.broadcast %168 : vector<1x32xf32> to vector<16x32xf32>
    %191 = arith.addf %189, %190 : vector<16x32xf32>
    %192 = vector.extract_strided_slice %191 {offsets = [0, 0], sizes = [8, 32], strides = [1, 1]} : vector<16x32xf32> to vector<8x32xf32>
    %193 = vector.extract_strided_slice %191 {offsets = [8, 0], sizes = [8, 32], strides = [1, 1]} : vector<16x32xf32> to vector<8x32xf32>
    %194 = arith.addf %192, %193 : vector<8x32xf32>
    %cst_75 = arith.constant 5.000000e-01 : f32
    %195 = vector.broadcast %cst_75 : f32 to vector<8x32xf32>
    %196 = arith.mulf %194, %195 : vector<8x32xf32>
    %c0_76 = arith.constant 0 : index
    %c0_77 = arith.constant 0 : index
    %c0_78 = arith.constant 0 : index
    %197 = vector.load %arg20[%c0_76, %c0_77, %c0_78] : memref<1x8x32xf32, #tpu.memory_space<vmem>>, vector<1x8x32xf32>
    %198 = vector.shape_cast %197 : vector<1x8x32xf32> to vector<8x32xf32>
    %199 = vector.shape_cast %196 : vector<8x32xf32> to vector<1x8x32xf32>
    tpu.vector_store %arg20[%c0_76, %c0_77, %c0_78], %199 {strides = array<i32>} : memref<1x8x32xf32, #tpu.memory_space<vmem>>, vector<1x8x32xf32>,
    return
  }
  func.func @transform_0(%arg0: i32) -> (i32, i32, i32) {
    %c0_i32 = arith.constant 0 : i32
    %c0_i32_0 = arith.constant 0 : i32
    %c0_i32_1 = arith.constant 0 : i32
    return %arg0, %c0_i32, %c0_i32_0 : i32, i32, i32
  }
  func.func @transform_1(%arg0: i32) -> (i32, i32, i32) {
    %c0_i32 = arith.constant 0 : i32
    %c0_i32_0 = arith.constant 0 : i32
    %c0_i32_1 = arith.constant 0 : i32
    return %arg0, %c0_i32, %c0_i32_0 : i32, i32, i32
  }
  func.func @transform_2(%arg0: i32) -> (i32, i32, i32) {
    %c0_i32 = arith.constant 0 : i32
    %c0_i32_0 = arith.constant 0 : i32
    %c0_i32_1 = arith.constant 0 : i32
    return %arg0, %c0_i32, %c0_i32_0 : i32, i32, i32
  }
  func.func @transform_3(%arg0: i32) -> (i32, i32) {
    %c0_i32 = arith.constant 0 : i32
    %c0_i32_0 = arith.constant 0 : i32
    %c0_i32_1 = arith.constant 0 : i32
    return %c0_i32, %c0_i32_0 : i32, i32
  }
  func.func @transform_4(%arg0: i32) -> (i32, i32) {
    %c0_i32 = arith.constant 0 : i32
    %c0_i32_0 = arith.constant 0 : i32
    %c0_i32_1 = arith.constant 0 : i32
    return %c0_i32, %c0_i32_0 : i32, i32
  }
  func.func @transform_5(%arg0: i32) -> (i32, i32) {
    %c0_i32 = arith.constant 0 : i32
    %c0_i32_0 = arith.constant 0 : i32
    %c0_i32_1 = arith.constant 0 : i32
    return %c0_i32, %c0_i32_0 : i32, i32
  }
  func.func @transform_6(%arg0: i32) -> (i32, i32) {
    %c0_i32 = arith.constant 0 : i32
    %c0_i32_0 = arith.constant 0 : i32
    %c0_i32_1 = arith.constant 0 : i32
    return %c0_i32, %c0_i32_0 : i32, i32
  }
  func.func @transform_7(%arg0: i32) -> (i32, i32) {
    %c0_i32 = arith.constant 0 : i32
    %c0_i32_0 = arith.constant 0 : i32
    %c0_i32_1 = arith.constant 0 : i32
    return %c0_i32, %c0_i32_0 : i32, i32
  }
  func.func @transform_8(%arg0: i32) -> (i32, i32) {
    %c0_i32 = arith.constant 0 : i32
    %c0_i32_0 = arith.constant 0 : i32
    %c0_i32_1 = arith.constant 0 : i32
    return %c0_i32, %c0_i32_0 : i32, i32
  }
  func.func @transform_9(%arg0: i32) -> (i32, i32) {
    %c0_i32 = arith.constant 0 : i32
    %c0_i32_0 = arith.constant 0 : i32
    %c0_i32_1 = arith.constant 0 : i32
    return %c0_i32, %c0_i32_0 : i32, i32
  }
  func.func @transform_10(%arg0: i32) -> (i32, i32) {
    %c0_i32 = arith.constant 0 : i32
    %c0_i32_0 = arith.constant 0 : i32
    %c0_i32_1 = arith.constant 0 : i32
    return %c0_i32, %c0_i32_0 : i32, i32
  }
  func.func @transform_11(%arg0: i32) -> (i32, i32) {
    %c0_i32 = arith.constant 0 : i32
    %c0_i32_0 = arith.constant 0 : i32
    %c0_i32_1 = arith.constant 0 : i32
    return %c0_i32, %c0_i32_0 : i32, i32
  }
  func.func @transform_12(%arg0: i32) -> (i32, i32) {
    %c0_i32 = arith.constant 0 : i32
    %c0_i32_0 = arith.constant 0 : i32
    %c0_i32_1 = arith.constant 0 : i32
    return %c0_i32, %c0_i32_0 : i32, i32
  }
  func.func @transform_13(%arg0: i32) -> (i32, i32) {
    %c0_i32 = arith.constant 0 : i32
    %c0_i32_0 = arith.constant 0 : i32
    %c0_i32_1 = arith.constant 0 : i32
    return %c0_i32, %c0_i32_0 : i32, i32
  }
  func.func @transform_14(%arg0: i32) -> (i32, i32) {
    %c0_i32 = arith.constant 0 : i32
    %c0_i32_0 = arith.constant 0 : i32
    %c0_i32_1 = arith.constant 0 : i32
    return %c0_i32, %c0_i32_0 : i32, i32
  }
  func.func @transform_15(%arg0: i32) -> (i32, i32) {
    %c0_i32 = arith.constant 0 : i32
    %c0_i32_0 = arith.constant 0 : i32
    %c0_i32_1 = arith.constant 0 : i32
    return %c0_i32, %c0_i32_0 : i32, i32
  }
  func.func @transform_16(%arg0: i32) -> (i32, i32) {
    %c0_i32 = arith.constant 0 : i32
    %c0_i32_0 = arith.constant 0 : i32
    %c0_i32_1 = arith.constant 0 : i32
    return %c0_i32, %c0_i32_0 : i32, i32
  }
  func.func @transform_17(%arg0: i32) -> (i32, i32) {
    %c0_i32 = arith.constant 0 : i32
    %c0_i32_0 = arith.constant 0 : i32
    %c0_i32_1 = arith.constant 0 : i32
    return %c0_i32, %c0_i32_0 : i32, i32
  }
  func.func @transform_18(%arg0: i32) -> (i32, i32) {
    %c0_i32 = arith.constant 0 : i32
    %c0_i32_0 = arith.constant 0 : i32
    %c0_i32_1 = arith.constant 0 : i32
    return %c0_i32, %c0_i32_0 : i32, i32
  }
  func.func @transform_19(%arg0: i32) -> (i32, i32, i32) {
    %c0_i32 = arith.constant 0 : i32
    %c0_i32_0 = arith.constant 0 : i32
    %c0_i32_1 = arith.constant 0 : i32
    return %arg0, %c0_i32, %c0_i32_0 : i32, i32, i32
  }
}

</mosaic_0001>

<bundles_post_ra>
// kernel: tpu_custom_call.1
= control target key start
LH: loop header
LB: loop body
LE: loop exit
PB: predicated region body
PF: predicated region fallthrough
CT: control target
= control target key end

     0   :  { %s6447_s0 = inlined_call_operand.vmem [shape: f32[2,8,32], index: 0, kind: input, shape index: {}]   ;;  %s6448_s1 = inlined_call_operand.vmem [shape: f32[2,8,32], index: 1, kind: input, shape index: {}]   ;;  %s6449_s2 = inlined_call_operand.vmem [shape: f32[2,8,32], index: 2, kind: input, shape index: {}]   ;;  %s6450_s3 = inlined_call_operand.hbm [shape: bf16[32,32], index: 3, kind: input, shape index: {}]   ;;  %s6451_s4 = inlined_call_operand.hbm [shape: bf16[32,32], index: 4, kind: input, shape index: {}]   ;;  %s6452_s5 = inlined_call_operand.hbm [shape: bf16[32,32], index: 5, kind: input, shape index: {}]   ;;  %s6453_s6 = inlined_call_operand.vmem [shape: f32[1,32], index: 6, kind: input, shape index: {}]   ;;  %s6454_s7 = inlined_call_operand.hbm [shape: f32[1,32], index: 7, kind: input, shape index: {}]   ;;  %s6455_s8 = inlined_call_operand.hbm [shape: bf16[32,32], index: 8, kind: input, shape index: {}]   ;;  %s6456_s9 = inlined_call_operand.vmem [shape: bf16[32,32], index: 9, kind: input, shape index: {}]   ;;  %s6457_s10 = inlined_call_operand.hbm [shape: bf16[32,32], index: 10, kind: input, shape index: {}]   ;;  %s6458_s11 = inlined_call_operand.hbm [shape: f32[1,32], index: 11, kind: input, shape index: {}]   ;;  %s6459_s12 = inlined_call_operand.hbm [shape: f32[1,32], index: 12, kind: input, shape index: {}]   ;;  %s6460_s13 = inlined_call_operand.vmem [shape: bf16[32,64], index: 13, kind: input, shape index: {}]   ;;  %s6461_s14 = inlined_call_operand.vmem [shape: f32[1,64], index: 14, kind: input, shape index: {}]   ;;  %s6462_s15 = inlined_call_operand.vmem [shape: bf16[64,32], index: 15, kind: input, shape index: {}]   ;;  %s6463_s16 = inlined_call_operand.vmem [shape: f32[1,32], index: 16, kind: input, shape index: {}]   ;;  %s6464_s17 = inlined_call_operand.vmem [shape: f32[1,32], index: 17, kind: input, shape index: {}]   ;;  %s6465_s18 = inlined_call_operand.vmem [shape: f32[1,32], index: 18, kind: input, shape index: {}]   ;;  %s6466_s19 = inlined_call_operand.hbm [shape: f32[2,8,32], index: 19, kind: output, shape index: {}]  }
   0x1   :  { %6481 = sst [smem:[#allocation31_spill]] %s6447_s0 }
   0x2   :  { %6482 = sst [smem:[#allocation32_spill]] %s6448_s1 }
   0x3   :  { %6483 = sst [smem:[#allocation33_spill]] %s6449_s2 }
   0x4   :  { %6484 = sst [smem:[#allocation34_spill]] %s6450_s3 }
   0x5   :  { %6485 = sst [smem:[#allocation35_spill]] %s6451_s4 }
   0x6   :  { %6486 = sst [smem:[#allocation36_spill]] %s6454_s7 }
   0x7   :  { %6487 = sst [smem:[#allocation37_spill]] %s6463_s16 }
   0x8   :  { %6488 = sst [smem:[#allocation38_spill]] %s6464_s17 }
   0x9   :  { %6489 = sst [smem:[#allocation39_spill]] %s6465_s18 }
   0xa   :  { %6490 = sst [smem:[#allocation40_spill]] %s6466_s19 }
   0xb   :  { %24 = vsyncpa [#allocation3], 0 }
   0xc   :  { %25 = vsyncpa [#allocation6], 0 }
   0xd   :  { %26 = vsyncpa [#allocation9], 0 }
   0xe   :  { %27 = vsyncpa [#allocation12], 0 }
   0xf   :  { %28 = vsyncpa [#allocation15], 0 }
  0x10   :  { %29 = vsyncpa [#allocation4], 0 }
  0x11   :  { %31 = vsyncpa [#allocation4 + $0x1], 0  ;;  %s5524_s0 = smov 0   ;;  %s5526_s30 = smov 0  }
  0x12   :  { %s5528_s20 = smov 0   ;;  %s5530_s21 = smov 0  }
  0x13 LB: > { %6491 = sst [smem:[#allocation23_spill]] %s5389_s0  ;;  %s5545_s1 = sadd.s32 4294967295, %s5401_s21   ;;  %s5401_s21 = sphi %s5530_s21, %s6533_s21   ;;  %s5397_s20 = sphi %s5528_s20, %s6536_s20   ;;  %s5393_s30 = sphi %s5526_s30, %s6535_s30   ;;  %s5389_s0 = sphi %s5524_s0, %s6534_s0  }
  0x14   : > { %6492 = sst [smem:[#allocation24_spill]] %s5393_s30  ;;  %s4483_s22 = sadd.s32 4294967294, %s5401_s21  }
  0x15   : > { %6493 = sst [smem:[#allocation25_spill]] %s5397_s20  ;;  %s5549_s2 = sadd.s32 1, %s5401_s21  }
  0x16   : > { %6494 = sst [smem:[#allocation26_spill]] %s5401_s21  ;;  %s458_s23 = sadd.s32 1, %s5397_s20 }
  0x17   : > { %6495 = sst [smem:[#allocation27_spill]] %s5549_s2  ;;  %s455_s24 = ssub.s32 %s5401_s21, %s5549_s2 }
  0x18   : > { %p468_p0 = scmp.ne.s32.totalorder %s5397_s20, %s5393_s30  ;;  %p456_p1 = scmp.eq.s32.totalorder %s455_s24, 0 }
  0x19   : > { %p469_p2 = scmp.eq.s32.totalorder %s5545_s1, 1  ;;  %p474_p3 = scmp.ne.s32.totalorder %s5393_s30, %s5389_s0 }
  0x1a   : > { %p475_p4 = scmp.eq.s32.totalorder %s4483_s22, 1  ;;  %p4484_p7 = scmp.ge.s32.totalorder %s5401_s21, 1 }
  0x1b   : > { %s5560_s25 = scalar_select %p456_p1, %s5397_s20, %s458_s23  }
  0x1c   : > { %p5562_p5 = por %p469_p2, %p468_p0  ;;  %p5566_p6 = por %p475_p4, %p474_p3 }
  0x1d   : > { %6496 = sst [smem:[#allocation28_spill]] %s5560_s25  ;;  %p482_p8 = scmp.lt.s32.totalorder %s5401_s21, 3 }
  0x1e   : > { %s6497_s3 = scalar_select %p5562_p5, 1, 0 }
  0x1f   : > { %s6499_s26 = scalar_select %p5566_p6, 1, 0 }
  0x20   : > { %6498 = sst [smem:[#allocation29_spill]] %s6497_s3  ;;  %p6475_p9 = scmp.eq.s32.totalorder %s5545_s1, 0 }
  0x21   : > { %6500 = sst [smem:[#allocation30_spill]] %s6499_s26  ;;  %p5573_p10 = pnand %p4484_p7, %p482_p8 }
  0x22   : > { %s5403_s28 = smov [#allocation5]   ;;  %s5404_s23 = smov [#allocation8]  }
  0x23   : > { %s6501_s27 = scalar_select %p5573_p10, 1, 0 }
  0x24   : > { %p4911_p11 = pneg %p5573_p10  ;;  %s507_s29 = sshll.u32 %s5403_s28, 4  ;;  %s5579_s29 = int_to_ptr.vmem [resolvable:$true] %s507_s29 }
  0x25   : > { %s537_s24 = sshll.u32 %s5404_s23, 4  ;;  %s5405_s25 = smov [#allocation11]   ;;  %s5587_s24 = int_to_ptr.vmem [resolvable:$true] %s537_s24 }
  0x26   : > { %p5583_p12 = pnand %p6475_p9, %p4911_p11  ;;  %s5589_s20 = sshll.u32 %s5405_s25, 4  ;;  %s564_s20 = int_to_ptr.vmem [resolvable:$true] %s5589_s20 }
  0x27   : > { %s6503_s4 = sld [smem:[#allocation35_spill]] }
  0x28   : > { %p5599_p0 = pneg %p5583_p12 }
  0x2d   : > { %s5095_s0 = scalar_lea.hbm %s6503_s4, 256 }
  0x2e   : > { %p5096_p13 = scmp.ne.s32.totalorder %s6503_s4, %s5095_s0  ;;  %p5102_p3 = scmp.lt.u32.totalorder %s5095_s0, %s6503_s4 }
  0x30   : > { %p5098_p1 = pnand %p5599_p0, %p5096_p13 }
  0x32   : > { %p5099_p2 = pneg %p5098_p1 }
  0x34   : > { %p5104_p4 = pnand %p5102_p3, %p5099_p2 }
  0x36   : > { %5107 = shalt.err (!%p5104_p4)
}
  0x37   : > { %s5108_s21 = scalar_lea.vmem %s5579_s29, 256  ;;  %p5116_p9 = scmp.lt.s32.totalorder %s5579_s29, %s5579_s29 }
  0x38   : > { %p5109_p7 = scmp.ne.s32.totalorder %s5579_s29, %s5108_s21  ;;  %p5117_p6 = scmp.lt.s32.totalorder %s5108_s21, %s5108_s21 }
  0x3a   : > { %p5111_p8 = pnand %p5109_p7, %p5599_p0  ;;  %p5118_p13 = por %p5117_p6, %p5116_p9 }
  0x3c   : > { %p5112_p11 = pneg %p5111_p8 }
  0x3e   : > { %p5119_p1 = pnand %p5118_p13, %p5112_p11 }
  0x40   : > { %5122 = shalt.err (!%p5119_p1)
}
  0x41   : > { %s5406_s2 = smov 64   ;;  %s5407_s0 = smov 4  }
  0x42   : > { %4917 = dma.hbm_to_vmem [thread:$0]  (!%p5583_p12), %s6503_s4, 256, %s5579_s29, [#allocation6], %s5406_s2, %s5406_s2, %s5407_s0  }
  0x43   : > { %s6505_s7 = sld [smem:[#allocation36_spill]] }
  0x49   : > { %s5123_s21 = scalar_lea.hbm %s6505_s7, 16 }
  0x4a   : > { %p5124_p6 = scmp.ne.s32.totalorder %s6505_s7, %s5123_s21  ;;  %p5130_p3 = scmp.lt.u32.totalorder %s5123_s21, %s6505_s7 }
  0x4c   : > { %p5126_p9 = pnand %p5124_p6, %p5599_p0 }
  0x4e   : > { %p5127_p2 = pneg %p5126_p9 }
  0x50   : > { %p5132_p4 = pnand %p5130_p3, %p5127_p2 }
  0x52   : > { %5135 = shalt.err (!%p5132_p4)
}
  0x53   : > { %s5136_s29 = scalar_lea.vmem %s5587_s24, 16  ;;  %s5143_s18 = scalar_lea.vmem %s5587_s24, 32 }
  0x54   : > { %p5137_p7 = scmp.ne.s32.totalorder %s5587_s24, %s5136_s29  ;;  %p5144_p13 = scmp.lt.s32.totalorder %s5587_s24, %s5587_s24 }
  0x55   : > { %p5145_p1 = scmp.lt.s32.totalorder %s5143_s18, %s5136_s29 }
  0x56   : > { %p5139_p8 = pnand %p5137_p7, %p5599_p0 }
  0x57   : > { %p5146_p6 = por %p5145_p1, %p5144_p13 }
  0x58   : > { %p5140_p11 = pneg %p5139_p8 }
  0x5a   : > { %p5147_p9 = pnand %p5146_p6, %p5140_p11 }
  0x5c   : > { %5150 = shalt.err (!%p5147_p9)
}
  0x5d   : > { %4923 = dma.hbm_to_vmem [thread:$0]  (!%p5583_p12), %s6505_s7, 16, %s5587_s24, [#allocation9]  }
  0x5e   : > { %s5151_s28 = scalar_lea.hbm %s6457_s10, 256 }
  0x5f   : > { %p5152_p2 = scmp.ne.s32.totalorder %s6457_s10, %s5151_s28  ;;  %p5158_p7 = scmp.lt.u32.totalorder %s5151_s28, %s6457_s10 }
  0x61   : > { %p5154_p3 = pnand %p5152_p2, %p5599_p0 }
  0x63   : > { %p5155_p4 = pneg %p5154_p3 }
  0x65   : > { %p5160_p8 = pnand %p5158_p7, %p5155_p4 }
  0x67   : > { %5163 = shalt.err (!%p5160_p8)
}
  0x68   : > { %s5164_s18 = scalar_lea.vmem %s564_s20, 256  ;;  %p5172_p6 = scmp.lt.s32.totalorder %s564_s20, %s564_s20 }
  0x69   : > { %p5165_p11 = scmp.ne.s32.totalorder %s564_s20, %s5164_s18  ;;  %p5173_p9 = scmp.lt.s32.totalorder %s5164_s18, %s5164_s18 }
  0x6b   : > { %p5167_p13 = pnand %p5165_p11, %p5599_p0  ;;  %p5174_p5 = por %p5173_p9, %p5172_p6 }
  0x6d   : > { %p5168_p1 = pneg %p5167_p13 }
  0x6f   : > { %p5175_p10 = pnand %p5174_p5, %p5168_p1 }
  0x71   : > { %5178 = shalt.err (!%p5175_p10)
}
  0x72   : > { %4929 = dma.hbm_to_vmem [thread:$0]  (!%p5583_p12), %s6457_s10, 256, %s564_s20, [#allocation12], %s5406_s2, %s5406_s2, %s5407_s0  }
  0x73   : > { %s5408_s30 = smov [#allocation2]   ;;  %s5409_s26 = smov [#allocation7]  }
  0x74   : > { %s494_s3 = sshll.u32 %s5408_s30, 4  ;;  %s520_s28 = sshll.u32 %s5409_s26, 4  ;;  %s495_s3 = int_to_ptr.vmem [resolvable:$true] %s494_s3  ;;  %s521_s28 = int_to_ptr.vmem [resolvable:$true] %s520_s28 }
  0x75   : > { %s6506_s21 = sld [smem:[#allocation34_spill]] }
  0x7b   : > { %s6507_s29 = smov %s6506_s21  ;;  %s5179_s18 = scalar_lea.hbm %s6506_s21, 256 }
  0x7c   : > { %p5180_p5 = scmp.ne.s32.totalorder %s6507_s29, %s5179_s18  ;;  %p5186_p3 = scmp.lt.u32.totalorder %s5179_s18, %s6507_s29 }
  0x7e   : > { %p5182_p10 = pnand %p5180_p5, %p5599_p0 }
  0x80   : > { %p5183_p2 = pneg %p5182_p10 }
  0x82   : > { %p5188_p4 = pnand %p5186_p3, %p5183_p2 }
  0x84   : > { %5191 = shalt.err (!%p5188_p4)
}
  0x85   : > { %s5192_s20 = scalar_lea.vmem %s495_s3, 256  ;;  %p5200_p13 = scmp.lt.s32.totalorder %s495_s3, %s495_s3 }
  0x86   : > { %p5193_p7 = scmp.ne.s32.totalorder %s495_s3, %s5192_s20  ;;  %p5201_p1 = scmp.lt.s32.totalorder %s5192_s20, %s5192_s20 }
  0x88   : > { %p5195_p8 = pnand %p5193_p7, %p5599_p0  ;;  %p5202_p6 = por %p5201_p1, %p5200_p13 }
  0x8a   : > { %p5196_p11 = pneg %p5195_p8 }
  0x8c   : > { %p5203_p9 = pnand %p5202_p6, %p5196_p11 }
  0x8e   : > { %5206 = shalt.err (!%p5203_p9)
}
  0x8f   : > { %4914 = dma.hbm_to_vmem [thread:$0]  (!%p5583_p12), %s6507_s29, 256, %s495_s3, [#allocation3], %s5406_s2, %s5406_s2, %s5407_s0  }
  0x90   : > { %s5207_s30 = scalar_lea.hbm %s6452_s5, 256 }
  0x91   : > { %p5208_p5 = scmp.ne.s32.totalorder %s6452_s5, %s5207_s30  ;;  %p5214_p3 = scmp.lt.u32.totalorder %s5207_s30, %s6452_s5 }
  0x93   : > { %p5210_p10 = pnand %p5208_p5, %p5599_p0 }
  0x95   : > { %p5211_p2 = pneg %p5210_p10 }
  0x97   : > { %p5216_p4 = pnand %p5214_p3, %p5211_p2 }
  0x99   : > { %5219 = shalt.err (!%p5216_p4)
}
  0x9a   : > { %s5220_s18 = scalar_lea.vmem %s521_s28, 256  ;;  %p5228_p13 = scmp.lt.s32.totalorder %s521_s28, %s521_s28 }
  0x9b   : > { %p5221_p7 = scmp.ne.s32.totalorder %s521_s28, %s5220_s18  ;;  %p5229_p1 = scmp.lt.s32.totalorder %s5220_s18, %s5220_s18 }
  0x9d   : > { %p5223_p8 = pnand %p5221_p7, %p5599_p0  ;;  %p5230_p6 = por %p5229_p1, %p5228_p13 }
  0x9f   : > { %p5224_p11 = pneg %p5223_p8 }
  0xa1   : > { %p5231_p9 = pnand %p5230_p6, %p5224_p11 }
  0xa3   : > { %5234 = shalt.err (!%p5231_p9)
}
  0xa4   : > { %4920 = dma.hbm_to_vmem [thread:$0]  (!%p5583_p12), %s6452_s5, 256, %s521_s28, [#allocation6], %s5406_s2, %s5406_s2, %s5407_s0  }
  0xa5   : > { %s5410_s20 = smov [#allocation10]   ;;  %s5411_s7 = smov [#allocation13]  }
  0xa6   : > { %s547_s4 = sshll.u32 %s5410_s20, 4  ;;  %s577_s16 = sshll.u32 %s5411_s7, 4  ;;  %s548_s4 = int_to_ptr.vmem [resolvable:$true] %s547_s4  ;;  %s578_s16 = int_to_ptr.vmem [resolvable:$true] %s577_s16 }
  0xa7   : > { %s5235_s26 = scalar_lea.hbm %s6455_s8, 256 }
  0xa8   : > { %p5236_p5 = scmp.ne.s32.totalorder %s6455_s8, %s5235_s26  ;;  %p5242_p3 = scmp.lt.u32.totalorder %s5235_s26, %s6455_s8 }
  0xaa   : > { %p5238_p10 = pnand %p5236_p5, %p5599_p0 }
  0xac   : > { %p5239_p2 = pneg %p5238_p10 }
  0xae   : > { %p5244_p4 = pnand %p5242_p3, %p5239_p2 }
  0xb0   : > { %5247 = shalt.err (!%p5244_p4)
}
  0xb1   : > { %s5248_s28 = scalar_lea.vmem %s548_s4, 256  ;;  %p5256_p13 = scmp.lt.s32.totalorder %s548_s4, %s548_s4 }
  0xb2   : > { %p5249_p7 = scmp.ne.s32.totalorder %s548_s4, %s5248_s28  ;;  %p5257_p1 = scmp.lt.s32.totalorder %s5248_s28, %s5248_s28 }
  0xb4   : > { %p5251_p8 = pnand %p5249_p7, %p5599_p0  ;;  %p5258_p6 = por %p5257_p1, %p5256_p13 }
  0xb6   : > { %p5252_p11 = pneg %p5251_p8 }
  0xb8   : > { %p5259_p9 = pnand %p5258_p6, %p5252_p11 }
  0xba   : > { %5262 = shalt.err (!%p5259_p9)
}
  0xbb   : > { %4926 = dma.hbm_to_vmem [thread:$0]  (!%p5583_p12), %s6455_s8, 256, %s548_s4, [#allocation9], %s5406_s2, %s5406_s2, %s5407_s0  }
  0xbc   : > { %s5263_s17 = scalar_lea.hbm %s6458_s11, 16 }
  0xbd   : > { %p5264_p5 = scmp.ne.s32.totalorder %s6458_s11, %s5263_s17  ;;  %p5270_p3 = scmp.lt.u32.totalorder %s5263_s17, %s6458_s11 }
  0xbf   : > { %p5266_p10 = pnand %p5264_p5, %p5599_p0 }
  0xc1   : > { %p5267_p2 = pneg %p5266_p10 }
  0xc3   : > { %p5272_p4 = pnand %p5270_p3, %p5267_p2 }
  0xc5   : > { %5275 = shalt.err (!%p5272_p4)
}
  0xc6   : > { %s5276_s21 = scalar_lea.vmem %s578_s16, 16  ;;  %s5283_s2 = scalar_lea.vmem %s578_s16, 32 }
  0xc7   : > { %p5277_p7 = scmp.ne.s32.totalorder %s578_s16, %s5276_s21  ;;  %p5284_p13 = scmp.lt.s32.totalorder %s578_s16, %s578_s16 }
  0xc8   : > { %p5285_p1 = scmp.lt.s32.totalorder %s5283_s2, %s5276_s21 }
  0xc9   : > { %p5279_p8 = pnand %p5277_p7, %p5599_p0 }
  0xca   : > { %p5286_p6 = por %p5285_p1, %p5284_p13 }
  0xcb   : > { %p5280_p11 = pneg %p5279_p8 }
  0xcd   : > { %p5287_p9 = pnand %p5286_p6, %p5280_p11 }
  0xcf   : > { %5290 = shalt.err (!%p5287_p9)
}
  0xd0   : > { %4932 = dma.hbm_to_vmem [thread:$0]  (!%p5583_p12), %s6458_s11, 16, %s578_s16, [#allocation12]  }
  0xd1   : > { %s5412_s18 = smov [#allocation14]   ;;  %s5291_s20 = scalar_lea.hbm %s6459_s12, 16 }
  0xd2   : > { %s588_s28 = sshll.u32 %s5412_s18, 4  ;;  %p5292_p5 = scmp.ne.s32.totalorder %s6459_s12, %s5291_s20  ;;  %s589_s28 = int_to_ptr.vmem [resolvable:$true] %s588_s28 }
  0xd3   : > { %p5298_p3 = scmp.lt.u32.totalorder %s5291_s20, %s6459_s12 }
  0xd4   : > { %p5294_p10 = pnand %p5292_p5, %p5599_p0 }
  0xd6   : > { %p5295_p2 = pneg %p5294_p10 }
  0xd8   : > { %p5300_p4 = pnand %p5298_p3, %p5295_p2 }
  0xda   : > { %5303 = shalt.err (!%p5300_p4)
}
  0xdb   : > { %s5304_s16 = scalar_lea.vmem %s589_s28, 16  ;;  %s5311_s23 = scalar_lea.vmem %s589_s28, 32 }
  0xdc   : > { %p5305_p7 = scmp.ne.s32.totalorder %s589_s28, %s5304_s16  ;;  %p5312_p13 = scmp.lt.s32.totalorder %s589_s28, %s589_s28 }
  0xdd   : > { %p5313_p1 = scmp.lt.s32.totalorder %s5311_s23, %s5304_s16 }
  0xde   : > { %p5307_p8 = pnand %p5305_p7, %p5599_p0 }
  0xdf   : > { %p5314_p6 = por %p5313_p1, %p5312_p13 }
  0xe0   : > { %p5308_p11 = pneg %p5307_p8 }
  0xe2   : > { %p5315_p9 = pnand %p5314_p6, %p5308_p11 }
  0xe4   : > { %5318 = shalt.err (!%p5315_p9)
}
  0xe5   : > { %4935 = dma.hbm_to_vmem [thread:$0]  (!%p5583_p12), %s6459_s12, 16, %s589_s28, [#allocation15]  }
  0xe6   : > { %p6508_p5 = scmp.ne.s32.totalorder %s6501_s27, 0 }
  0xe7   : > { %p6509_p10 = scmp.eq.s32.totalorder (!%p6508_p5), %s5545_s1, 0 }
  0xe8   : > { %640 = sbr.rel (%p6508_p5) target bundleno = 4845 (0x12ed), region = 96 }
  0xef   : > { %5364 = dma.done.wait (%p6509_p10), [#allocation3], 256   ;;  %p6510_p0 = pmov %p6509_p10 }
  0xf1   : > { %5366 = vsyncadd (%p6510_p0), [#allocation3], 4294967040  ;;  %p6511_p2 = pmov %p6510_p0 }
  0xf2   : > { %p6512_p3 = pmov %p6510_p0 }
  0xf3   : > { %5368 = dma.done.wait (%p6511_p2), [#allocation6], 512  }
  0xf4   : > { %5370 = vsyncadd (%p6512_p3), [#allocation6], 4294966784  ;;  %p6513_p4 = pmov %p6510_p0 }
  0xf5   : > { %p6514_p12 = pmov %p6510_p0 }
  0xf6   : > { %5372 = dma.done.wait (%p6513_p4), [#allocation9], 272  }
  0xf7   : > { %5374 = vsyncadd (%p6514_p12), [#allocation9], 4294967024  ;;  %p6515_p7 = pmov %p6510_p0 }
  0xf8   : > { %p6516_p8 = pmov %p6510_p0 }
  0xf9   : > { %5376 = dma.done.wait (%p6515_p7), [#allocation12], 272  }
  0xfa   : > { %5378 = vsyncadd (%p6516_p8), [#allocation12], 4294967024  ;;  %p6517_p11 = pmov %p6510_p0 }
  0xfb   : > { %p6518_p13 = pmov %p6510_p0 }
  0xfc   : > { %5380 = dma.done.wait (%p6517_p11), [#allocation15], 16  }
  0xfd   : > { %5382 = vsyncadd (%p6518_p13), [#allocation15], 4294967280  ;;  %p731_p1 = scmp.lt.s32.totalorder %s5545_s1, 1  ;;  %v5413_v0 = vmov 0.0   ;;  %vm5414_vm0 = vmmov 0   ;;  %v5009_v1 = vld [vmem:[#allocation5] sm:$0xff]   ;;  %v933_v19 = vlaneseq }
  0xfe   : > { %4673 = vmatprep.subr.bf16.mxu1 %v5413_v0  ;;  %4665 = vmatprep.subr.bf16.mxu0 %v5413_v0  ;;  %s6519_s0 = sld [smem:[#allocation31_spill]]  ;;  %v5010_v2 = vld [vmem:[#allocation2] sm:$0xff]   ;;  %v5011_v3 = vld [vmem:[#allocation5 + $0x8] sm:$0xff]   ;;  %vm762_vm1 = vcmask 261120   ;;  %v5012_v5 = vld [vmem:[#allocation2 + $0x8] sm:$0xff]   ;;  %s5415_s18 = smov 104  }
  0xff   : > { %4677 = vmatprep.mubr.msk.bf16.mxu1 %vm5414_vm0, %v5413_v0  ;;  %s732_s19 = scalar_select %p731_p1, %s5545_s1, 1  ;;  %4669 = vmatprep.mubr.msk.bf16.mxu0 %vm5414_vm0, %v5413_v0  ;;  %v5013_v7 = vld [vmem:[#allocation7] sm:$0xff]   ;;  %v5014_v15 = vld [vmem:[#allocation7 + $0x8] sm:$0xff]   ;;  %v5418_v17 = vmov 1983009808   ;;  %v934_v23 = vshrl.u32 %v933_v19, 7 }
 0x100   : > { %4674 = vmatpush3.bf16.msra.mxu1 %v5009_v1  ;;  %4666 = vmatpush3.bf16.msra.mxu0 %v5010_v2  ;;  %s5416_s28 = smov 120   ;;  %s5417_s3 = smov 112   ;;  %v931_v18 = vunpack.c.l.s4 %v5418_v17  ;;  %v5419_v20 = vmov 1934713408   ;;  %vm1368_vm2 = vcmask 64512   ;;  %vm1604_vm3 = vcmask 1043456  }
 0x101   : > { %s5798_s27 = sshll.u32 %s732_s19, 3  ;;  %4675 = vmatprep.subr.bf16.mxu1 %v5413_v0  ;;  %4667 = vmatprep.subr.bf16.mxu0 %v5413_v0  ;;  %v963_v21 = vunpack.c.l.s4 %v5419_v20  ;;  %s5420_s24 = smov 16   ;;  %vm1935_vm4 = vcmask 130048   ;;  %vm1937_vm5 = vcmask 195584   ;;  %vm4199_vm12 = vcmask 523264  }
 0x102   : > { %v932_v22 = vunpack.c.0.s8 %v931_v18  ;;  %s5421_s20 = smov 8   ;;  %s5422_s7 = smov 24  }
 0x103   : > { %v964_v26 = vunpack.c.0.s8 %v963_v21  ;;  %s6520_s23 = sld [smem:[#allocation32_spill]]  ;;  %s6521_s22 = sld [smem:[#allocation33_spill]] }
 0x104   : > { %s734_s4 = scalar_lea.vmem %s6519_s0, %s5798_s27  ;;  %4676 = vmatpush3.bf16.msra.mxu1 %v5011_v3  ;;  %4668 = vmatpush3.bf16.msra.mxu0 %v5012_v5  ;;  %v5829_v27 = vsub.s32 %v932_v22, %v934_v23  ;;  %s6525_s30 = sld [smem:[#allocation39_spill]] }
 0x105   : > { %v5805_v4 = vld [vmem:[%s734_s4] sm:$0xff]  ;;  %4689 = vmatprep.subr.bf16.mxu1 %v5413_v0  ;;  %4681 = vmatprep.subr.bf16.mxu0 %v5413_v0  ;;  %v5831_v34 = vsub.s32 %v964_v26, %v934_v23  ;;  %s6522_s4 = sld [smem:[#allocation37_spill]]  ;;  %s6526_s26 = sld [smem:[#allocation29_spill]] }
 0x106   : > { %v745_v6 = vpack.c.bf16 %v5805_v4, %v5805_v4  ;;  %s4588_s16 = sshll.u32 %s5545_s1, 7  ;;  %s5423_s1 = smov [#allocation16]  }
 0x108   : > { %4678 = vmatmul.mubr.msk.bf16.vlgmr.msra.gmra.mrb[0].mxu1 %vm762_vm1, %v745_v6  ;;  %4670 = vmatmul.mubr.msk.bf16.vlgmr.msra.gmra.mrb[0].mxu0 %vm762_vm1, %v745_v6 }
 0x109   : > { %4691 = vmatprep.mubr.msk.bf16.mxu1 %vm5414_vm0, %v5413_v0  ;;  %4685 = vmatprep.mubr.msk.bf16.mxu0 %vm5414_vm0, %v5413_v0  ;;  %s738_s25 = scalar_lea.vmem %s6520_s23, %s5798_s27  ;;  %s742_s2 = scalar_lea.vmem %s6521_s22, %s5798_s27 }
 0x10a   : > { %4682 = vmatpush3.bf16.msra.mxu0 %v5013_v7  ;;  %s6523_s27 = sld [smem:[#allocation24_spill]]  ;;  %s6527_s22 = sld [smem:[#allocation40_spill]] }
 0x10b   : > { %4683 = vmatprep.subr.bf16.mxu0 %v5413_v0  ;;  %p6528_p9 = scmp.ne.s32.totalorder %s6526_s26, 0 }
 0x10e   : > { %4684 = vmatpush3.bf16.msra.mxu0 %v5014_v15 }
 0x10f   : > { %4695 = vmatprep.subr.bf16.mxu0 %v5413_v0 }
 0x110   : > { %s728_s17 = sand.u32 1, %s6523_s27   ;;  %s5323_s27 = sshll.u32 %s5423_s1, 4  ;;  %s5324_s27 = int_to_ptr.vmem [resolvable:$false] %s5323_s27 }
 0x111   : > { %4686 = vmatmul.mubr.msk.bf16.vlgmr.msra.gmra.mrb[4].mxu0 %vm762_vm1, %v745_v6  ;;  %s4308_s0 = scalar_lea.sflag [#allocation4], %s728_s17 }
 0x112   : > { %4697 = vmatprep.mubr.msk.bf16.mxu0 %vm5414_vm0, %v5413_v0 }
 0x1db   : > { %v856_v8 = vpop.f32.mrb[0].mxu1  ;;  %v800_v10 = vpop.f32.mrb[0].mxu0 }
 0x1dc   : > { %1075 = vrot.lane.b32.xlu1 %v856_v8, %s5415_s18  ;;  %1069 = vrot.lane.b32.xlu0 %v856_v8, %s5416_s28  ;;  %v4679_v9 = vpop.f32.mrb[1].mxu1  ;;  %v4671_v12 = vpop.f32.mrb[1].mxu0 }
 0x1dd   : > { %v859_v11 = vpop.f32.mrb[2].mxu1  ;;  %v803_v14 = vpop.f32.mrb[2].mxu0 }
 0x1de   : > { %v4680_v13 = vpop.f32.mrb[3].mxu1  ;;  %v4672_v16 = vpop.f32.mrb[3].mxu0 }
 0x1e0   : > { %1072 = vrot.lane.b32.xlu0 %v856_v8, %s5417_s3  ;;  %919 = vrot.lane.b32.xlu1 %v800_v10, %s5416_s28 }
 0x1e4   : > { %922 = vrot.lane.b32.xlu0 %v800_v10, %s5417_s3  ;;  %925 = vrot.lane.b32.xlu1 %v800_v10, %s5415_s18 }
 0x24e   : > { %v1076_v24 = vpop.permute.xlu1 %1075  ;;  %v1070_v25 = vpop.permute.xlu0 %1069 }
 0x24f   : > { %v1094_v28 = vcombine.low %v1070_v25, %v1076_v24  ;;  %v1095_v29 = vcombine.high %v1070_v25, %v1076_v24 }
 0x251   : > { %v1102_v35 = vrot.slane %v1094_v28, %v5829_v27  ;;  %v1109_v36 = vrot.slane %v1095_v29, %v5829_v27 }
 0x252   : > { %v1073_v30 = vpop.permute.xlu0 %1072  ;;  %v920_v31 = vpop.permute.xlu1 %919 }
 0x253   : > { %v1078_v32 = vcombine.low %v856_v8, %v1073_v30  ;;  %v1079_v33 = vcombine.high %v856_v8, %v1073_v30 }
 0x255   : > { %v1086_v37 = vrot.slane %v1078_v32, %v5829_v27  ;;  %v1093_v38 = vrot.slane %v1079_v33, %v5829_v27 }
 0x256   : > { %v923_v39 = vpop.permute.xlu0 %922  ;;  %v926_v40 = vpop.permute.xlu1 %925 }
 0x257   : > { %v1110_v41 = vcombine.low %v1086_v37, %v1102_v35  ;;  %v1111_v42 = vcombine.high %v1086_v37, %v1102_v35  ;;  %v1126_v43 = vcombine.low %v1093_v38, %v1109_v36  ;;  %v1127_v44 = vcombine.high %v1093_v38, %v1109_v36 }
 0x258   : > { %v928_v45 = vcombine.low %v800_v10, %v923_v39  ;;  %v929_v46 = vcombine.high %v800_v10, %v923_v39  ;;  %v944_v47 = vcombine.low %v920_v31, %v926_v40  ;;  %v945_v48 = vcombine.high %v920_v31, %v926_v40 }
 0x259   : > { %v1118_v49 = vrot.slane %v1110_v41, %v5831_v34  ;;  %v1125_v50 = vrot.slane %v1111_v42, %v5831_v34  ;;  %v1134_v51 = vrot.slane %v1126_v43, %v5831_v34  ;;  %v1141_v52 = vrot.slane %v1127_v44, %v5831_v34 }
 0x25a   : > { %v936_v53 = vrot.slane %v928_v45, %v5829_v27  ;;  %v943_v54 = vrot.slane %v929_v46, %v5829_v27  ;;  %v952_v55 = vrot.slane %v944_v47, %v5829_v27  ;;  %v959_v56 = vrot.slane %v945_v48, %v5829_v27 }
 0x25b   : > { %v1146_v57 = vcombine.low %v1118_v49, %v1125_v50  ;;  %v4518_v58 = vcombine.high %v1118_v49, %v1125_v50  ;;  %v1162_v59 = vcombine.low %v1134_v51, %v1141_v52  ;;  %v4519_v60 = vcombine.high %v1134_v51, %v1141_v52 }
 0x25c   : > { %v960_v61 = vcombine.low %v936_v53, %v952_v55  ;;  %v961_v62 = vcombine.high %v936_v53, %v952_v55  ;;  %v976_v63 = vcombine.low %v943_v54, %v959_v56  ;;  %v977_v1 = vcombine.high %v943_v54, %v959_v56 }
 0x25d   : > { %v1153_v2 = vrot.slane %v1146_v57, %v5829_v27  ;;  %v1161_v3 = vrot.slane %v4518_v58, %v5829_v27  ;;  %v1169_v5 = vrot.slane %v1162_v59, %v5829_v27  ;;  %v1177_v6 = vrot.slane %v4519_v60, %v5829_v27  ;;  %v5885_v57 = vpop.f32.mrb[4].mxu0 }
 0x25e   : > { %v968_v7 = vrot.slane %v960_v61, %v5831_v34  ;;  %v975_v8 = vrot.slane %v961_v62, %v5831_v34  ;;  %v984_v9 = vrot.slane %v976_v63, %v5831_v34  ;;  %v991_v10 = vrot.slane %v977_v1, %v5831_v34  ;;  %v4687_v58 = vpop.f32.mrb[5].mxu0 }
 0x25f   : > { %v1178_v11 = vcombine.low %v1153_v2, %v1161_v3  ;;  %v1194_v12 = vcombine.low %v1169_v5, %v1177_v6  ;;  %v1179_v13 = vcombine.high %v1153_v2, %v1161_v3  ;;  %v1195_v14 = vcombine.high %v1169_v5, %v1177_v6  ;;  %v915_v59 = vpop.f32.mrb[6].mxu0 }
 0x260   : > { %v996_v15 = vcombine.low %v968_v7, %v975_v8  ;;  %v4516_v16 = vcombine.high %v968_v7, %v975_v8  ;;  %v1012_v17 = vcombine.low %v984_v9, %v991_v10  ;;  %v4517_v18 = vcombine.high %v984_v9, %v991_v10  ;;  %v4688_v60 = vpop.f32.mrb[7].mxu0 }
 0x261   : > { %v1186_v19 = vrot.slane %v1178_v11, %v5831_v34  ;;  %v1202_v20 = vrot.slane %v1194_v12, %v5831_v34  ;;  %v1193_v28 = vrot.slane %v1179_v13, %v5831_v34  ;;  %v1209_v29 = vrot.slane %v1195_v14, %v5831_v34 }
 0x262   : > { %v1003_v21 = vrot.slane %v996_v15, %v5829_v27  ;;  %v1011_v22 = vrot.slane %v4516_v16, %v5829_v27  ;;  %v1019_v23 = vrot.slane %v1012_v17, %v5829_v27  ;;  %v1027_v24 = vrot.slane %v4517_v18, %v5829_v27 }
 0x263   : > { %v1210_v25 = vcombine.low %v1186_v19, %v1202_v20  ;;  %v1211_v26 = vcombine.high %v1186_v19, %v1202_v20  ;;  %v1212_v39 = vcombine.low %v1193_v28, %v1209_v29  ;;  %v1213_v40 = vcombine.high %v1193_v28, %v1209_v29 }
 0x264   : > { %v1028_v30 = vcombine.low %v1003_v21, %v1011_v22  ;;  %v1044_v31 = vcombine.low %v1019_v23, %v1027_v24  ;;  %v1029_v41 = vcombine.high %v1003_v21, %v1011_v22  ;;  %v1045_v42 = vcombine.high %v1019_v23, %v1027_v24 }
 0x265   : > { %v1214_v32 = vpack.c.bf16 %v1210_v25, %v1210_v25  ;;  %v1215_v33 = vpack.c.bf16 %v1211_v26, %v1211_v26  ;;  %v1216_v45 = vpack.c.bf16 %v1212_v39, %v1212_v39  ;;  %v1217_v46 = vpack.c.bf16 %v1213_v40, %v1213_v40 }
 0x266   : > { %v1036_v35 = vrot.slane %v1028_v30, %v5831_v34  ;;  %v1052_v36 = vrot.slane %v1044_v31, %v5831_v34  ;;  %v1043_v49 = vrot.slane %v1029_v41, %v5831_v34  ;;  %v1059_v50 = vrot.slane %v1045_v42, %v5831_v34 }
 0x267   : > { %v1373_v37 = vsel %vm1368_vm2, %v1214_v32, 0  ;;  %v1419_v38 = vsel %vm1368_vm2, %v1215_v33, 0  ;;  %v1465_v51 = vsel %vm1368_vm2, %v1216_v45, 0  ;;  %v1511_v52 = vsel %vm1368_vm2, %v1217_v46, 0 }
 0x268   : > { %4690 = vmatpush3.bf16.xpose.msra.mxu1 %v1373_v37  ;;  %4696 = vmatpush3.bf16.xpose.msra.mxu0 %v1419_v38  ;;  %v1060_v43 = vcombine.low %v1036_v35, %v1052_v36  ;;  %v1061_v44 = vcombine.high %v1036_v35, %v1052_v36  ;;  %v1062_v53 = vcombine.low %v1043_v49, %v1059_v50 }
 0x269   : > { %4701 = vmatprep.subr.bf16.mxu1 %v5413_v0  ;;  %4707 = vmatprep.subr.bf16.mxu0 %v5413_v0  ;;  %v1063_v54 = vcombine.high %v1043_v49, %v1059_v50 }
 0x26a   : > { %v1064_v47 = vpack.c.bf16 %v1060_v43, %v1060_v43  ;;  %v1065_v48 = vpack.c.bf16 %v1061_v44, %v1061_v44  ;;  %v1066_v55 = vpack.c.bf16 %v1062_v53, %v1062_v53 }
 0x26b   : > { %v1067_v56 = vpack.c.bf16 %v1063_v54, %v1063_v54 }
 0x26f   : > { %4692 = vmatmul.mubr.msk.bf16.vlgmr.msra.gmra.mrb[4].mxu1 %vm1368_vm2, %v1064_v47  ;;  %4698 = vmatmul.mubr.msk.bf16.vlgmr.msra.gmra.mrb[8].mxu0 %vm1368_vm2, %v1065_v48 }
 0x270   : > { %4702 = vmatpush3.bf16.xpose.msra.mxu1 %v1465_v51  ;;  %4708 = vmatpush3.bf16.xpose.msra.mxu0 %v1511_v52 }
 0x271   : > { %4703 = vmatprep.mubr.msk.bf16.mxu1 %vm5414_vm0, %v5413_v0  ;;  %4709 = vmatprep.mubr.msk.bf16.mxu0 %vm5414_vm0, %v5413_v0 }
 0x272   : > { %4713 = vmatprep.subr.bf16.mxu1 %v5413_v0  ;;  %4719 = vmatprep.subr.bf16.mxu0 %v5413_v0 }
 0x277   : > { %4704 = vmatmul.mubr.msk.bf16.vlgmr.msra.gmra.mrb[8].mxu1 %vm1368_vm2, %v1066_v55  ;;  %4710 = vmatmul.mubr.msk.bf16.vlgmr.msra.gmra.mrb[12].mxu0 %vm1368_vm2, %v1067_v56 }
 0x278   : > { %4715 = vmatprep.mubr.msk.bf16.mxu1 %vm5414_vm0, %v5413_v0  ;;  %4721 = vmatprep.mubr.msk.bf16.mxu0 %vm5414_vm0, %v5413_v0 }
 0x342   : > { %v1409_v61 = vpop.f32.mrb[4].mxu1  ;;  %v1455_v62 = vpop.f32.mrb[8].mxu0 }
 0x343   : > { %v4693_v63 = vpop.f32.mrb[5].mxu1  ;;  %v4699_v1 = vpop.f32.mrb[9].mxu0  ;;  %v1553_v2 = vsel %vm1368_vm2, %v1409_v61, -inf  ;;  %v1556_v3 = vsel %vm1368_vm2, %v1455_v62, -inf }
 0x344   : > { %1554 = vmax.xlane.f32.xlu0 %v1553_v2  ;;  %v1412_v5 = vpop.f32.mrb[6].mxu1  ;;  %1557 = vmax.xlane.f32.xlu1 %v1556_v3  ;;  %v1458_v6 = vpop.f32.mrb[10].mxu0 }
 0x345   : > { %v4694_v7 = vpop.f32.mrb[7].mxu1  ;;  %v4700_v8 = vpop.f32.mrb[11].mxu0 }
 0x34a   : > { %v1501_v9 = vpop.f32.mrb[8].mxu1  ;;  %v1547_v10 = vpop.f32.mrb[12].mxu0 }
 0x34b   : > { %v4705_v11 = vpop.f32.mrb[9].mxu1  ;;  %v4711_v12 = vpop.f32.mrb[13].mxu0  ;;  %v1559_v13 = vsel %vm1368_vm2, %v1501_v9, -inf  ;;  %v1562_v18 = vsel %vm1368_vm2, %v1547_v10, -inf }
 0x34c   : > { %1560 = vmax.xlane.f32.xlu0 %v1559_v13  ;;  %v1504_v14 = vpop.f32.mrb[10].mxu1  ;;  %v1550_v15 = vpop.f32.mrb[14].mxu0 }
 0x34d   : > { %v4706_v16 = vpop.f32.mrb[11].mxu1  ;;  %v4712_v17 = vpop.f32.mrb[15].mxu0 }
 0x350   : > { %1563 = vmax.xlane.f32.xlu0 %v1562_v18 }
 0x355   : > { %1219 = vrot.lane.b32.xlu1 %v5885_v57, %s5416_s28 }
 0x3d1   : > { %v1555_v19 = vpop.xlane.xlu0 %1554  ;;  %v1558_v20 = vpop.xlane.xlu1 %1557 }
 0x3d2   : > { %v1565_v21 = vsub.f32 %v1409_v61, %v1555_v19  ;;  %v1566_v22 = vsub.f32 %v1455_v62, %v1558_v20 }
 0x3d4   : > { %v1569_v23 = vmul.f32 1.442695, %v1565_v21  ;;  %v1571_v24 = vmul.f32 1.442695, %v1566_v22 }
 0x3d5   : > { %v1220_v41 = vpop.permute.xlu1 %1219 }
 0x3d6   : > { %5027 = vpow2.f32 %v1569_v23 }
 0x3d7   : > { %5029 = vpow2.f32 %v1571_v24 }
 0x3d9   : > { %v1561_v30 = vpop.xlane.xlu0 %1560 }
 0x3da   : > { %v1567_v32 = vsub.f32 %v1501_v9, %v1561_v30 }
 0x3dc   : > { %v1573_v35 = vmul.f32 1.442695, %v1567_v32 }
 0x3dd   : > { %v1564_v31 = vpop.xlane.xlu0 %1563 }
 0x3de   : > { %v1568_v33 = vsub.f32 %v1547_v10, %v1564_v31  ;;  %5031 = vpow2.f32 %v1573_v35 }
 0x3e0   : > { %v5893_v25 = vpop.eup %5027  ;;  %v1575_v36 = vmul.f32 1.442695, %v1568_v33 }
 0x3e1   : > { %v5895_v26 = vpop.eup %5029  ;;  %v1577_v28 = vsel %vm1368_vm2, %v5893_v25, 0.0 }
 0x3e2   : > { %1578 = vadd.xlane.f32.xlu1 %v1577_v28  ;;  %v1580_v29 = vsel %vm1368_vm2, %v5895_v26, 0.0  ;;  %5033 = vpow2.f32 %v1575_v36 }
 0x3e3   : > { %1581 = vadd.xlane.f32.xlu0 %v1580_v29 }
 0x3e8   : > { %v5905_v37 = vpop.eup %5031 }
 0x3e9   : > { %v1583_v39 = vsel %vm1368_vm2, %v5905_v37, 0.0 }
 0x3ec   : > { %v5907_v38 = vpop.eup %5033 }
 0x3ed   : > { %v1586_v40 = vsel %vm1368_vm2, %v5907_v38, 0.0 }
 0x3f3   : > { %1225 = vrot.lane.b32.xlu1 %v5885_v57, %s5415_s18 }
 0x3f9   : > { %1222 = vrot.lane.b32.xlu0 %v5885_v57, %s5417_s3 }
 0x417   : > { %1584 = vadd.xlane.f32.xlu1 %v1583_v39 }
 0x418   : > { %1587 = vadd.xlane.f32.xlu0 %v1586_v40 }
 0x46f   : > { %v1579_v42 = vpop.xlane.xlu1 %1578 }
 0x470   : > { %v1582_v43 = vpop.xlane.xlu0 %1581  ;;  %5035 = vrcp.f32 %v1579_v42 }
 0x471   : > { %5037 = vrcp.f32 %v1582_v43 }
 0x473   : > { %v1226_v44 = vpop.permute.xlu1 %1225 }
 0x474   : > { %v1244_v45 = vcombine.low %v1220_v41, %v1226_v44  ;;  %v1245_v46 = vcombine.high %v1220_v41, %v1226_v44  ;;  %v1223_v47 = vpop.permute.xlu0 %1222 }
 0x475   : > { %v1228_v48 = vcombine.low %v5885_v57, %v1223_v47  ;;  %v1229_v49 = vcombine.high %v5885_v57, %v1223_v47 }
 0x476   : > { %v1252_v50 = vrot.slane %v1244_v45, %v5829_v27  ;;  %v1259_v51 = vrot.slane %v1245_v46, %v5829_v27 }
 0x477   : > { %v1236_v52 = vrot.slane %v1228_v48, %v5829_v27  ;;  %v1243_v53 = vrot.slane %v1229_v49, %v5829_v27 }
 0x479   : > { %v1260_v54 = vcombine.low %v1236_v52, %v1252_v50  ;;  %v1261_v55 = vcombine.high %v1236_v52, %v1252_v50  ;;  %v1276_v56 = vcombine.low %v1243_v53, %v1259_v51  ;;  %v1277_v58 = vcombine.high %v1243_v53, %v1259_v51 }
 0x47a   : > { %v5036_v14 = vpop.eup %5035 }
 0x47b   : > { %v1268_v59 = vrot.slane %v1260_v54, %v5831_v34  ;;  %v1275_v60 = vrot.slane %v1261_v55, %v5831_v34  ;;  %v1284_v57 = vrot.slane %v1276_v56, %v5831_v34  ;;  %v1291_v61 = vrot.slane %v1277_v58, %v5831_v34  ;;  %v5038_v17 = vpop.eup %5037 }
 0x47c   : > { %v1593_v22 = vmul.f32 %v5036_v14, %v5893_v25  ;;  %v1594_v23 = vmul.f32 %v5038_v17, %v5895_v26 }
 0x47d   : > { %v1296_v62 = vcombine.low %v1268_v59, %v1275_v60  ;;  %v4520_v63 = vcombine.high %v1268_v59, %v1275_v60  ;;  %v1312_v1 = vcombine.low %v1284_v57, %v1291_v61  ;;  %v4521_v2 = vcombine.high %v1284_v57, %v1291_v61 }
 0x47e   : > { %v1597_v33 = vpack.c.bf16 %v1593_v22, %v1593_v22  ;;  %v1598_v35 = vpack.c.bf16 %v1594_v23, %v1594_v23 }
 0x47f   : > { %v1303_v3 = vrot.slane %v1296_v62, %v5829_v27  ;;  %v1311_v5 = vrot.slane %v4520_v63, %v5829_v27  ;;  %v1319_v6 = vrot.slane %v1312_v1, %v5829_v27  ;;  %v1327_v7 = vrot.slane %v4521_v2, %v5829_v27 }
 0x481   : > { %v1328_v8 = vcombine.low %v1303_v3, %v1311_v5  ;;  %v1329_v9 = vcombine.high %v1303_v3, %v1311_v5  ;;  %v1344_v10 = vcombine.low %v1319_v6, %v1327_v7  ;;  %v1345_v11 = vcombine.high %v1319_v6, %v1327_v7 }
 0x483   : > { %v1336_v12 = vrot.slane %v1328_v8, %v5831_v34  ;;  %v1343_v13 = vrot.slane %v1329_v9, %v5831_v34  ;;  %v1352_v15 = vrot.slane %v1344_v10, %v5831_v34  ;;  %v1359_v16 = vrot.slane %v1345_v11, %v5831_v34 }
 0x485   : > { %v1360_v18 = vcombine.low %v1336_v12, %v1352_v15  ;;  %v1361_v19 = vcombine.high %v1336_v12, %v1352_v15  ;;  %v1362_v20 = vcombine.low %v1343_v13, %v1359_v16  ;;  %v1363_v21 = vcombine.high %v1343_v13, %v1359_v16 }
 0x487   : > { %v1364_v24 = vpack.c.bf16 %v1360_v18, %v1360_v18  ;;  %v1365_v28 = vpack.c.bf16 %v1361_v19, %v1361_v19  ;;  %v1366_v31 = vpack.c.bf16 %v1362_v20, %v1362_v20  ;;  %v1367_v32 = vpack.c.bf16 %v1363_v21, %v1363_v21 }
 0x489   : > { %v1606_v29 = vsel %vm1604_vm3, %v1364_v24, 0  ;;  %v1652_v30 = vsel %vm1604_vm3, %v1365_v28, 0  ;;  %v1698_v25 = vsel %vm1604_vm3, %v1366_v31, 0  ;;  %v1744_v26 = vsel %vm1604_vm3, %v1367_v32, 0 }
 0x48a   : > { %4714 = vmatpush3.bf16.msra.mxu1 %v1606_v29  ;;  %4720 = vmatpush3.bf16.msra.mxu0 %v1652_v30 }
 0x48b   : > { %4725 = vmatprep.subr.bf16.mxu1 %v5413_v0  ;;  %4731 = vmatprep.subr.bf16.mxu0 %v5413_v0 }
 0x48d   : > { %4716 = vmatmul.mubr.msk.bf16.vlgmr.msra.gmra.mrb[12].mxu1 %vm1368_vm2, %v1597_v33  ;;  %4722 = vmatmul.mubr.msk.bf16.vlgmr.msra.gmra.mrb[16].mxu0 %vm1368_vm2, %v1598_v35 }
 0x48e   : > { %4726 = vmatpush3.bf16.msra.mxu1 %v1698_v25  ;;  %4732 = vmatpush3.bf16.msra.mxu0 %v1744_v26 }
 0x48f   : > { %4727 = vmatprep.mubr.msk.bf16.mxu1 %vm5414_vm0, %v5413_v0  ;;  %4733 = vmatprep.mubr.msk.bf16.mxu0 %vm5414_vm0, %v5413_v0 }
 0x490   : > { %4745 = vmatprep.subr.bf16.mxu0 %v5413_v0  ;;  %4737 = vmatprep.subr.bf16.mxu1 %v5413_v0 }
 0x4a4   : > { %v1585_v36 = vpop.xlane.xlu1 %1584 }
 0x4a5   : > { %5039 = vrcp.f32 %v1585_v36  ;;  %v1588_v39 = vpop.xlane.xlu0 %1587 }
 0x4a6   : > { %5041 = vrcp.f32 %v1588_v39 }
 0x4af   : > { %v5040_v40 = vpop.eup %5039 }
 0x4b0   : > { %v5042_v41 = vpop.eup %5041  ;;  %v1595_v42 = vmul.f32 %v5040_v40, %v5905_v37 }
 0x4b1   : > { %v1596_v43 = vmul.f32 %v5042_v41, %v5907_v38 }
 0x4b2   : > { %v1599_v44 = vpack.c.bf16 %v1595_v42, %v1595_v42 }
 0x4b3   : > { %v1600_v45 = vpack.c.bf16 %v1596_v43, %v1596_v43 }
 0x4b4   : > { %4728 = vmatmul.mubr.msk.bf16.vlgmr.msra.gmra.mrb[16].mxu1 %vm1368_vm2, %v1599_v44 }
 0x4b5   : > { %4734 = vmatmul.mubr.msk.bf16.vlgmr.msra.gmra.mrb[20].mxu0 %vm1368_vm2, %v1600_v45  ;;  %4741 = vmatprep.mubr.msk.bf16.mxu1 %vm5414_vm0, %v5413_v0 }
 0x4b6   : > { %4749 = vmatprep.mubr.msk.bf16.mxu0 %vm5414_vm0, %v5413_v0 }
 0x560   : > { %v1642_v46 = vpop.f32.mrb[12].mxu1  ;;  %v1688_v47 = vpop.f32.mrb[16].mxu0 }
 0x561   : > { %v4717_v48 = vpop.f32.mrb[13].mxu1  ;;  %v4723_v49 = vpop.f32.mrb[17].mxu0 }
 0x562   : > { %v1645_v50 = vpop.f32.mrb[14].mxu1  ;;  %v1691_v37 = vpop.f32.mrb[18].mxu0  ;;  %v2038_v48 = vld [vmem:[%s742_s2] sm:$0xff]  ;;  %s6404_s2 = scalar_lea.hbm %s6527_s22, %s4588_s16 }
 0x563   : > { %v4718_v51 = vpop.f32.mrb[15].mxu1  ;;  %v4724_v38 = vpop.f32.mrb[19].mxu0 }
 0x587   : > { %v1734_v52 = vpop.f32.mrb[16].mxu1 }
 0x588   : > { %v1786_v53 = vcombine.low %v1642_v46, %v1734_v52  ;;  %v1787_v54 = vcombine.high %v1642_v46, %v1734_v52  ;;  %v1780_v55 = vpop.f32.mrb[20].mxu0  ;;  %v4729_v56 = vpop.f32.mrb[17].mxu1  ;;  %v5015_v46 = vld [vmem:[%s6456_s9] sm:$0xff]  }
 0x589   : > { %v1802_v58 = vcombine.low %v1688_v47, %v1780_v55  ;;  %v1803_v59 = vcombine.high %v1688_v47, %v1780_v55  ;;  %v4735_v60 = vpop.f32.mrb[21].mxu0  ;;  %v1737_v57 = vpop.f32.mrb[18].mxu1  ;;  %4746 = vmatpush3.bf16.msra.mxu0 %v5015_v46  ;;  %v2037_v47 = vld [vmem:[%s738_s25] sm:$0xff] }
 0x58a   : > { %v1794_v61 = vrot.slane %v1786_v53, %v5829_v27  ;;  %v1801_v62 = vrot.slane %v1787_v54, %v5829_v27  ;;  %v1783_v63 = vpop.f32.mrb[22].mxu0  ;;  %v4730_v1 = vpop.f32.mrb[19].mxu1  ;;  %4747 = vmatprep.subr.bf16.mxu0 %v5413_v0  ;;  %v5994_v49 = vpack.c.bf16 %v2038_v48, %v2037_v47  ;;  %v5017_v53 = vld [vmem:[#allocation10] sm:$0xff]   ;;  %v5018_v54 = vld [vmem:[#allocation10 + $0x8] sm:$0xff]  }
 0x58b   : > { %v1810_v2 = vrot.slane %v1802_v58, %v5829_v27  ;;  %v1817_v3 = vrot.slane %v1803_v59, %v5829_v27  ;;  %v4736_v5 = vpop.f32.mrb[23].mxu0  ;;  %4738 = vmatpush3.bf16.msra.mxu1 %v5017_v53 }
 0x58c   : > { %4739 = vmatprep.subr.bf16.mxu1 %v5413_v0 }
 0x58d   : > { %v1818_v6 = vcombine.low %v1794_v61, %v1810_v2  ;;  %v1819_v7 = vcombine.high %v1794_v61, %v1810_v2  ;;  %v1834_v8 = vcombine.low %v1801_v62, %v1817_v3  ;;  %v1835_v9 = vcombine.high %v1801_v62, %v1817_v3 }
 0x58f   : > { %v1826_v10 = vrot.slane %v1818_v6, %v5831_v34  ;;  %v1833_v11 = vrot.slane %v1819_v7, %v5831_v34  ;;  %v1842_v12 = vrot.slane %v1834_v8, %v5831_v34  ;;  %v1849_v13 = vrot.slane %v1835_v9, %v5831_v34  ;;  %4740 = vmatpush3.bf16.msra.mxu1 %v5018_v54  ;;  %v4532_v6 = vld [vmem:[%s6453_s6] ss:$0 sm:$0xff]  ;;  %v4533_v8 = vld [vmem:[#allocation8] ss:$0 sm:$0xff] }
 0x590   : > { %4753 = vmatprep.subr.bf16.mxu1 %v5413_v0 }
 0x591   : > { %v1854_v14 = vcombine.low %v1826_v10, %v1833_v11  ;;  %v4530_v15 = vcombine.high %v1826_v10, %v1833_v11  ;;  %v1870_v16 = vcombine.low %v1842_v12, %v1849_v13  ;;  %v4531_v17 = vcombine.high %v1842_v12, %v1849_v13 }
 0x593   : > { %v1861_v18 = vrot.slane %v1854_v14, %v5829_v27  ;;  %v1869_v19 = vrot.slane %v4530_v15, %v5829_v27  ;;  %v1877_v20 = vrot.slane %v1870_v16, %v5829_v27  ;;  %v1885_v21 = vrot.slane %v4531_v17, %v5829_v27 }
 0x595   : > { %v1887_v22 = vcombine.high %v1861_v18, %v1869_v19  ;;  %v1903_v23 = vcombine.high %v1877_v20, %v1885_v21  ;;  %v1886_v24 = vcombine.low %v1861_v18, %v1869_v19  ;;  %v1902_v28 = vcombine.low %v1877_v20, %v1885_v21 }
 0x597   : > { %v1901_v29 = vrot.slane %v1887_v22, %v5831_v34  ;;  %v1917_v30 = vrot.slane %v1903_v23, %v5831_v34  ;;  %v1894_v31 = vrot.slane %v1886_v24, %v5831_v34  ;;  %v1910_v32 = vrot.slane %v1902_v28, %v5831_v34 }
 0x599   : > { %v1920_v33 = vcombine.low %v1901_v29, %v1917_v30  ;;  %v1919_v35 = vcombine.high %v1894_v31, %v1910_v32  ;;  %v1921_v25 = vcombine.high %v1901_v29, %v1917_v30  ;;  %v1918_v26 = vcombine.low %v1894_v31, %v1910_v32 }
 0x59b   : > { %1927 = vrot.lane.b32.xlu1 %v1920_v33, %s5420_s24  ;;  %1923 = vrot.lane.b32.xlu0 %v1919_v35, %s5421_s20 }
 0x59f   : > { %1931 = vrot.lane.b32.xlu1 %v1921_v25, %s5422_s7 }
 0x60d   : > { %v1928_v36 = vpop.permute.xlu1 %1927  ;;  %v1924_v39 = vpop.permute.xlu0 %1923 }
 0x60e   : > { %v1934_v40 = vsel %vm1368_vm2, %v1918_v26, %v1924_v39  ;;  %v5019_v39 = vld [vmem:[#allocation11] sm:$0xff]  }
 0x60f   : > { %v1936_v42 = vsel %vm1935_vm4, %v1934_v40, %v1928_v36 }
 0x611   : > { %v1932_v41 = vpop.permute.xlu1 %1931 }
 0x612   : > { %v1938_v43 = vsel %vm1937_vm5, %v1936_v42, %v1932_v41 }
 0x613   : > { %v1939_v44 = vadd.f32 %v1938_v43, %v5805_v4  ;;  %v5016_v4 = vld [vmem:[%s6456_s9 + $0x8] sm:$0xff]  }
 0x614   : > { %4748 = vmatpush3.bf16.msra.mxu0 %v5016_v4 }
 0x615   : > { %v1942_v45 = vsel %vm762_vm1, %v1939_v44, 0.0  ;;  %4761 = vmatprep.subr.bf16.mxu0 %v5413_v0 }
 0x616   : > { %1943 = vadd.xlane.f32.xlu0 %v1942_v45 }
 0x617   : > { %4750 = vmatmul.mubr.msk.bf16.vlgmr.msra.gmra.mrb[24].mxu0 %vm762_vm1, %v5994_v49 }
 0x618   : > { %4763 = vmatprep.mubr.msk.bf16.mxu0 %vm5414_vm0, %v5413_v0 }
 0x6a3   : > { %v1944_v50 = vpop.xlane.xlu0 %1943 }
 0x6a4   : > { %v1946_v37 = vmul.f32 0.03125, %v1944_v50 }
 0x6a6   : > { %v1947_v51 = vsub.f32 %v1939_v44, %v1946_v37  ;;  %v5020_v44 = vld [vmem:[#allocation11 + $0x8] sm:$0xff]  }
 0x6a8   : > { %v1948_v38 = vmul.f32 %v1947_v51, %v1947_v51 }
 0x6aa   : > { %v1949_v52 = vsel %vm762_vm1, %v1948_v38, 0.0 }
 0x6ab   : > { %1950 = vadd.xlane.f32.xlu1 %v1949_v52 }
 0x6ea   : > { %v2093_v55 = vpop.f32.mrb[24].mxu0 }
 0x6eb   : > { %2308 = vrot.lane.b32.xlu0 %v2093_v55, %s5416_s28  ;;  %2311 = vrot.lane.b32.xlu1 %v2093_v55, %s5417_s3  ;;  %v4751_v56 = vpop.f32.mrb[25].mxu0 }
 0x6ec   : > { %v6006_v58 = vpop.f32.mrb[26].mxu0 }
 0x6ed   : > { %v4752_v59 = vpop.f32.mrb[27].mxu0 }
 0x6ef   : > { %2314 = vrot.lane.b32.xlu0 %v2093_v55, %s5415_s18 }
 0x738   : > { %v1951_v60 = vpop.xlane.xlu1 %1950 }
 0x739   : > { %v1952_v57 = vmul.f32 0.032258064, %v1951_v60 }
 0x73b   : > { %5043 = vrsqrt.f32 %v1952_v57  ;;  %vm1955_vm6 = vcmp.eq.f32.partialorder %v1952_v57, inf  ;;  %v1958_v63 = vand.u32 2147483648, %v1952_v57  ;;  %vm1957_vm7 = vcmp.eq.f32.partialorder %v1952_v57, 0.0 }
 0x745   : > { %v5044_v61 = vpop.eup %5043 }
 0x746   : > { %v1954_v62 = vmul.f32 %v5044_v61, %v1952_v57 }
 0x748   : > { %v1956_v1 = vsel %vm1955_vm6, %v1952_v57, %v1954_v62 }
 0x749   : > { %v1959_v2 = vsel %vm1957_vm7, %v1958_v63, %v1956_v1 }
 0x74a   : > { %v1960_v3 = vadd.f32 0.001, %v1959_v2 }
 0x74c   : > { %5045 = vrcp.f32 %v1960_v3 }
 0x756   : > { %v5046_v5 = vpop.eup %5045 }
 0x757   : > { %v1962_v7 = vmul.f32 %v5046_v5, %v1947_v51 }
 0x759   : > { %v1969_v9 = vmul.f32 %v4532_v6, %v1962_v7 }
 0x75b   : > { %v6012_v10 = vadd.f32 %v4533_v8, %v1969_v9 }
 0x75d   : > { %v1977_v11 = vpack.c.bf16 %v6012_v10, %v6012_v10  ;;  %v2309_v12 = vpop.permute.xlu0 %2308  ;;  %v2312_v13 = vpop.permute.xlu1 %2311 }
 0x75e   : > { %v2317_v15 = vcombine.low %v2093_v55, %v2312_v13  ;;  %v2318_v16 = vcombine.high %v2093_v55, %v2312_v13 }
 0x75f   : > { %4742 = vmatmul.mubr.msk.bf16.vlgmr.msra.gmra.mrb[20].mxu1 %vm762_vm1, %v1977_v11 }
 0x760   : > { %4757 = vmatprep.mubr.msk.bf16.mxu1 %vm5414_vm0, %v5413_v0  ;;  %v2325_v19 = vrot.slane %v2317_v15, %v5829_v27  ;;  %v2332_v20 = vrot.slane %v2318_v16, %v5829_v27  ;;  %4754 = vmatpush3.bf16.msra.mxu1 %v5019_v39 }
 0x761   : > { %v2315_v14 = vpop.permute.xlu0 %2314  ;;  %4755 = vmatprep.subr.bf16.mxu1 %v5413_v0 }
 0x762   : > { %v2333_v17 = vcombine.low %v2309_v12, %v2315_v14  ;;  %v2334_v18 = vcombine.high %v2309_v12, %v2315_v14 }
 0x764   : > { %v2341_v21 = vrot.slane %v2333_v17, %v5829_v27  ;;  %v2348_v22 = vrot.slane %v2334_v18, %v5829_v27  ;;  %4756 = vmatpush3.bf16.msra.mxu1 %v5020_v44 }
 0x765   : > { %4767 = vmatprep.subr.bf16.mxu1 %v5413_v0 }
 0x766   : > { %v2349_v23 = vcombine.low %v2325_v19, %v2341_v21  ;;  %v2350_v24 = vcombine.high %v2325_v19, %v2341_v21  ;;  %v2365_v28 = vcombine.low %v2332_v20, %v2348_v22  ;;  %v2366_v29 = vcombine.high %v2332_v20, %v2348_v22 }
 0x767   : > { %4758 = vmatmul.mubr.msk.bf16.vlgmr.msra.gmra.mrb[24].mxu1 %vm762_vm1, %v5994_v49 }
 0x768   : > { %v2357_v30 = vrot.slane %v2349_v23, %v5831_v34  ;;  %v2364_v31 = vrot.slane %v2350_v24, %v5831_v34  ;;  %v2373_v32 = vrot.slane %v2365_v28, %v5831_v34  ;;  %v2380_v33 = vrot.slane %v2366_v29, %v5831_v34  ;;  %4769 = vmatprep.mubr.msk.bf16.mxu1 %vm5414_vm0, %v5413_v0 }
 0x76a   : > { %v2385_v35 = vcombine.low %v2357_v30, %v2364_v31  ;;  %v4545_v25 = vcombine.high %v2357_v30, %v2364_v31  ;;  %v2401_v26 = vcombine.low %v2373_v32, %v2380_v33  ;;  %v4546_v36 = vcombine.high %v2373_v32, %v2380_v33 }
 0x76c   : > { %v2392_v40 = vrot.slane %v2385_v35, %v5829_v27  ;;  %v2400_v41 = vrot.slane %v4545_v25, %v5829_v27  ;;  %v2408_v42 = vrot.slane %v2401_v26, %v5829_v27  ;;  %v2416_v43 = vrot.slane %v4546_v36, %v5829_v27 }
 0x76e   : > { %v2417_v45 = vcombine.low %v2392_v40, %v2400_v41  ;;  %v2433_v46 = vcombine.low %v2408_v42, %v2416_v43  ;;  %v2418_v4 = vcombine.high %v2392_v40, %v2400_v41  ;;  %v2434_v47 = vcombine.high %v2408_v42, %v2416_v43 }
 0x770   : > { %v2425_v48 = vrot.slane %v2417_v45, %v5831_v34  ;;  %v2441_v50 = vrot.slane %v2433_v46, %v5831_v34  ;;  %v2432_v37 = vrot.slane %v2418_v4, %v5831_v34  ;;  %v2448_v51 = vrot.slane %v2434_v47, %v5831_v34 }
 0x772   : > { %v2449_v38 = vcombine.low %v2425_v48, %v2441_v50  ;;  %v2450_v52 = vcombine.high %v2425_v48, %v2441_v50  ;;  %v6041_v53 = vcombine.low %v2432_v37, %v2448_v51  ;;  %v6043_v54 = vcombine.high %v2432_v37, %v2448_v51 }
 0x774   : > { %v2453_v55 = vpack.c.bf16 %v2449_v38, %v2449_v38  ;;  %v2454_v56 = vpack.c.bf16 %v2450_v52, %v2450_v52  ;;  %v2455_v45 = vpack.c.bf16 %v6041_v53, %v6041_v53  ;;  %v2456_v46 = vpack.c.bf16 %v6043_v54, %v6043_v54 }
 0x776   : > { %v2611_v59 = vsel %vm1368_vm2, %v2453_v55, 0  ;;  %v2657_v60 = vsel %vm1368_vm2, %v2454_v56, 0  ;;  %v2703_v37 = vsel %vm1368_vm2, %v2455_v45, 0  ;;  %v2749_v51 = vsel %vm1368_vm2, %v2456_v46, 0 }
 0x777   : > { %4762 = vmatpush3.bf16.xpose.msra.mxu0 %v2611_v59  ;;  %4768 = vmatpush3.bf16.xpose.msra.mxu1 %v2657_v60 }
 0x778   : > { %4773 = vmatprep.subr.bf16.mxu0 %v5413_v0  ;;  %4779 = vmatprep.subr.bf16.mxu1 %v5413_v0 }
 0x832   : > { %v2031_v49 = vpop.f32.mrb[20].mxu1 }
 0x833   : > { %v4743_v57 = vpop.f32.mrb[21].mxu1  ;;  %2158 = vrot.lane.b32.xlu1 %v2031_v49, %s5416_s28  ;;  %2161 = vrot.lane.b32.xlu0 %v2031_v49, %s5417_s3 }
 0x834   : > { %v2034_v61 = vpop.f32.mrb[22].mxu1 }
 0x835   : > { %v4744_v62 = vpop.f32.mrb[23].mxu1 }
 0x837   : > { %2164 = vrot.lane.b32.xlu1 %v2031_v49, %s5415_s18 }
 0x83a   : > { %v6052_v63 = vpop.f32.mrb[24].mxu1 }
 0x83b   : > { %v4759_v1 = vpop.f32.mrb[25].mxu1 }
 0x83c   : > { %v6054_v2 = vpop.f32.mrb[26].mxu1 }
 0x83d   : > { %v4760_v3 = vpop.f32.mrb[27].mxu1 }
 0x8a5   : > { %v2159_v5 = vpop.permute.xlu1 %2158  ;;  %v2162_v6 = vpop.permute.xlu0 %2161 }
 0x8a6   : > { %v2167_v7 = vcombine.low %v2031_v49, %v2162_v6  ;;  %v2168_v8 = vcombine.high %v2031_v49, %v2162_v6 }
 0x8a8   : > { %v2175_v13 = vrot.slane %v2167_v7, %v5829_v27  ;;  %v2182_v14 = vrot.slane %v2168_v8, %v5829_v27 }
 0x8a9   : > { %v2165_v9 = vpop.permute.xlu1 %2164 }
 0x8aa   : > { %v2183_v11 = vcombine.low %v2159_v5, %v2165_v9  ;;  %v2184_v12 = vcombine.high %v2159_v5, %v2165_v9 }
 0x8ac   : > { %v2191_v15 = vrot.slane %v2183_v11, %v5829_v27  ;;  %v2198_v16 = vrot.slane %v2184_v12, %v5829_v27 }
 0x8ae   : > { %v2199_v17 = vcombine.low %v2175_v13, %v2191_v15  ;;  %v2200_v18 = vcombine.high %v2175_v13, %v2191_v15  ;;  %v2215_v19 = vcombine.low %v2182_v14, %v2198_v16  ;;  %v2216_v20 = vcombine.high %v2182_v14, %v2198_v16 }
 0x8b0   : > { %v2207_v21 = vrot.slane %v2199_v17, %v5831_v34  ;;  %v2214_v22 = vrot.slane %v2200_v18, %v5831_v34  ;;  %v2223_v23 = vrot.slane %v2215_v19, %v5831_v34  ;;  %v2230_v24 = vrot.slane %v2216_v20, %v5831_v34 }
 0x8b2   : > { %v2235_v28 = vcombine.low %v2207_v21, %v2214_v22  ;;  %v4543_v29 = vcombine.high %v2207_v21, %v2214_v22  ;;  %v2251_v30 = vcombine.low %v2223_v23, %v2230_v24  ;;  %v4544_v31 = vcombine.high %v2223_v23, %v2230_v24 }
 0x8b4   : > { %v2242_v32 = vrot.slane %v2235_v28, %v5829_v27  ;;  %v2250_v33 = vrot.slane %v4543_v29, %v5829_v27  ;;  %v2258_v35 = vrot.slane %v2251_v30, %v5829_v27  ;;  %v2266_v25 = vrot.slane %v4544_v31, %v5829_v27 }
 0x8b6   : > { %v2267_v26 = vcombine.low %v2242_v32, %v2250_v33  ;;  %v2283_v36 = vcombine.low %v2258_v35, %v2266_v25  ;;  %v2268_v39 = vcombine.high %v2242_v32, %v2250_v33  ;;  %v2284_v40 = vcombine.high %v2258_v35, %v2266_v25 }
 0x8b8   : > { %v2275_v41 = vrot.slane %v2267_v26, %v5831_v34  ;;  %v2291_v42 = vrot.slane %v2283_v36, %v5831_v34  ;;  %v2282_v48 = vrot.slane %v2268_v39, %v5831_v34  ;;  %v2298_v50 = vrot.slane %v2284_v40, %v5831_v34 }
 0x8ba   : > { %v2299_v43 = vcombine.low %v2275_v41, %v2291_v42  ;;  %v2300_v44 = vcombine.high %v2275_v41, %v2291_v42  ;;  %v2301_v38 = vcombine.low %v2282_v48, %v2298_v50  ;;  %v2302_v52 = vcombine.high %v2282_v48, %v2298_v50 }
 0x8bc   : > { %v6074_v4 = vpack.c.bf16 %v2299_v43, %v2299_v43  ;;  %v6076_v47 = vpack.c.bf16 %v2300_v44, %v2300_v44  ;;  %v6092_v53 = vpack.c.bf16 %v2301_v38, %v2301_v38  ;;  %v6094_v54 = vpack.c.bf16 %v2302_v52, %v2302_v52 }
 0x8be   : > { %4764 = vmatmul.mubr.msk.bf16.vlgmr.msra.gmra.mrb[28].mxu0 %vm1368_vm2, %v6074_v4  ;;  %4770 = vmatmul.mubr.msk.bf16.vlgmr.msra.gmra.mrb[28].mxu1 %vm1368_vm2, %v6076_v47 }
 0x8bf   : > { %4774 = vmatpush3.bf16.xpose.msra.mxu0 %v2703_v37  ;;  %4780 = vmatpush3.bf16.xpose.msra.mxu1 %v2749_v51 }
 0x8c0   : > { %4775 = vmatprep.mubr.msk.bf16.mxu0 %vm5414_vm0, %v5413_v0  ;;  %4781 = vmatprep.mubr.msk.bf16.mxu1 %vm5414_vm0, %v5413_v0 }
 0x8c1   : > { %4785 = vmatprep.subr.bf16.mxu0 %v5413_v0  ;;  %4791 = vmatprep.subr.bf16.mxu1 %v5413_v0 }
 0x8c6   : > { %4776 = vmatmul.mubr.msk.bf16.vlgmr.msra.gmra.mrb[32].mxu0 %vm1368_vm2, %v6092_v53  ;;  %4782 = vmatmul.mubr.msk.bf16.vlgmr.msra.gmra.mrb[32].mxu1 %vm1368_vm2, %v6094_v54 }
 0x8c7   : > { %4787 = vmatprep.mubr.msk.bf16.mxu0 %vm5414_vm0, %v5413_v0  ;;  %4793 = vmatprep.mubr.msk.bf16.mxu1 %vm5414_vm0, %v5413_v0 }
 0x991   : > { %v2647_v55 = vpop.f32.mrb[28].mxu0  ;;  %v2693_v56 = vpop.f32.mrb[28].mxu1 }
 0x992   : > { %v4765_v59 = vpop.f32.mrb[29].mxu0  ;;  %v4771_v60 = vpop.f32.mrb[29].mxu1  ;;  %v2794_v49 = vsel %vm1368_vm2, %v2693_v56, -inf  ;;  %v2791_v57 = vsel %vm1368_vm2, %v2647_v55, -inf }
 0x993   : > { %2795 = vmax.xlane.f32.xlu1 %v2794_v49  ;;  %v2696_v61 = vpop.f32.mrb[30].mxu1  ;;  %2792 = vmax.xlane.f32.xlu0 %v2791_v57  ;;  %v2650_v62 = vpop.f32.mrb[30].mxu0 }
 0x994   : > { %v4766_v1 = vpop.f32.mrb[31].mxu0  ;;  %v4772_v3 = vpop.f32.mrb[31].mxu1 }
 0x999   : > { %v2739_v5 = vpop.f32.mrb[32].mxu0  ;;  %v2785_v6 = vpop.f32.mrb[32].mxu1 }
 0x99a   : > { %v4777_v7 = vpop.f32.mrb[33].mxu0  ;;  %v4783_v8 = vpop.f32.mrb[33].mxu1  ;;  %v2797_v9 = vsel %vm1368_vm2, %v2739_v5, -inf  ;;  %v2800_v15 = vsel %vm1368_vm2, %v2785_v6, -inf }
 0x99b   : > { %v2788_v11 = vpop.f32.mrb[34].mxu1  ;;  %2798 = vmax.xlane.f32.xlu0 %v2797_v9  ;;  %v2742_v12 = vpop.f32.mrb[34].mxu0 }
 0x99c   : > { %v4778_v13 = vpop.f32.mrb[35].mxu0  ;;  %v4784_v14 = vpop.f32.mrb[35].mxu1 }
 0x99f   : > { %2801 = vmax.xlane.f32.xlu0 %v2800_v15 }
 0x9a4   : > { %2458 = vrot.lane.b32.xlu1 %v6052_v63, %s5416_s28 }
 0x9a8   : > { %2464 = vrot.lane.b32.xlu1 %v6052_v63, %s5415_s18 }
 0x9b5   : > { %2461 = vrot.lane.b32.xlu0 %v6052_v63, %s5417_s3 }
 0xa20   : > { %v2796_v16 = vpop.xlane.xlu1 %2795  ;;  %v2793_v17 = vpop.xlane.xlu0 %2792 }
 0xa21   : > { %v2804_v18 = vsub.f32 %v2693_v56, %v2796_v16  ;;  %v2803_v19 = vsub.f32 %v2647_v55, %v2793_v17 }
 0xa23   : > { %v2809_v20 = vmul.f32 1.442695, %v2804_v18  ;;  %v2807_v21 = vmul.f32 1.442695, %v2803_v19 }
 0xa24   : > { %v2459_v22 = vpop.permute.xlu1 %2458 }
 0xa25   : > { %5047 = vpow2.f32 %v2809_v20 }
 0xa26   : > { %5049 = vpow2.f32 %v2807_v21 }
 0xa28   : > { %v2799_v23 = vpop.xlane.xlu0 %2798  ;;  %v2465_v29 = vpop.permute.xlu1 %2464 }
 0xa29   : > { %v2805_v24 = vsub.f32 %v2739_v5, %v2799_v23  ;;  %v2483_v33 = vcombine.low %v2459_v22, %v2465_v29  ;;  %v2484_v35 = vcombine.high %v2459_v22, %v2465_v29 }
 0xa2b   : > { %v2811_v28 = vmul.f32 1.442695, %v2805_v24  ;;  %v2491_v43 = vrot.slane %v2483_v33, %v5829_v27  ;;  %v2498_v44 = vrot.slane %v2484_v35, %v5829_v27 }
 0xa2c   : > { %v2802_v30 = vpop.xlane.xlu0 %2801 }
 0xa2d   : > { %5051 = vpow2.f32 %v2811_v28  ;;  %v2806_v31 = vsub.f32 %v2785_v6, %v2802_v30 }
 0xa2f   : > { %v6114_v32 = vpop.eup %5047  ;;  %v2813_v25 = vmul.f32 1.442695, %v2806_v31 }
 0xa30   : > { %v6116_v26 = vpop.eup %5049  ;;  %v2462_v36 = vpop.permute.xlu0 %2461  ;;  %v2818_v39 = vsel %vm1368_vm2, %v6114_v32, 0.0 }
 0xa31   : > { %5053 = vpow2.f32 %v2813_v25  ;;  %v2467_v40 = vcombine.low %v6052_v63, %v2462_v36  ;;  %v2468_v41 = vcombine.high %v6052_v63, %v2462_v36  ;;  %v2815_v42 = vsel %vm1368_vm2, %v6116_v26, 0.0  ;;  %2819 = vadd.xlane.f32.xlu0 %v2818_v39 }
 0xa32   : > { %2816 = vadd.xlane.f32.xlu1 %v2815_v42 }
 0xa33   : > { %v2475_v45 = vrot.slane %v2467_v40, %v5829_v27  ;;  %v2482_v46 = vrot.slane %v2468_v41, %v5829_v27 }
 0xa35   : > { %v2499_v48 = vcombine.low %v2475_v45, %v2491_v43  ;;  %v2500_v50 = vcombine.high %v2475_v45, %v2491_v43  ;;  %v2515_v37 = vcombine.low %v2482_v46, %v2498_v44  ;;  %v2516_v51 = vcombine.high %v2482_v46, %v2498_v44 }
 0xa37   : > { %v6128_v38 = vpop.eup %5051  ;;  %v2507_v63 = vrot.slane %v2499_v48, %v5831_v34  ;;  %v2514_v52 = vrot.slane %v2500_v50, %v5831_v34  ;;  %v2523_v55 = vrot.slane %v2515_v37, %v5831_v34  ;;  %v2530_v56 = vrot.slane %v2516_v51, %v5831_v34 }
 0xa38   : > { %v2821_v59 = vsel %vm1368_vm2, %v6128_v38, 0.0 }
 0xa39   : > { %v2535_v60 = vcombine.low %v2507_v63, %v2514_v52  ;;  %v4547_v49 = vcombine.high %v2507_v63, %v2514_v52  ;;  %v2551_v57 = vcombine.low %v2523_v55, %v2530_v56  ;;  %v4548_v61 = vcombine.high %v2523_v55, %v2530_v56  ;;  %2822 = vadd.xlane.f32.xlu1 %v2821_v59 }
 0xa3b   : > { %v6136_v62 = vpop.eup %5053  ;;  %v2542_v1 = vrot.slane %v2535_v60, %v5829_v27  ;;  %v2550_v3 = vrot.slane %v4547_v49, %v5829_v27  ;;  %v2558_v5 = vrot.slane %v2551_v57, %v5829_v27  ;;  %v2566_v6 = vrot.slane %v4548_v61, %v5829_v27 }
 0xa3c   : > { %v2824_v7 = vsel %vm1368_vm2, %v6136_v62, 0.0 }
 0xa3d   : > { %2825 = vadd.xlane.f32.xlu0 %v2824_v7  ;;  %v2567_v8 = vcombine.low %v2542_v1, %v2550_v3  ;;  %v2583_v9 = vcombine.low %v2558_v5, %v2566_v6  ;;  %v2568_v11 = vcombine.high %v2542_v1, %v2550_v3  ;;  %v2584_v12 = vcombine.high %v2558_v5, %v2566_v6 }
 0xa3f   : > { %v2575_v13 = vrot.slane %v2567_v8, %v5831_v34  ;;  %v2591_v14 = vrot.slane %v2583_v9, %v5831_v34  ;;  %v2582_v15 = vrot.slane %v2568_v11, %v5831_v34  ;;  %v2598_v16 = vrot.slane %v2584_v12, %v5831_v34 }
 0xa41   : > { %v2599_v17 = vcombine.low %v2575_v13, %v2591_v14  ;;  %v2600_v18 = vcombine.high %v2575_v13, %v2591_v14  ;;  %v2601_v19 = vcombine.low %v2582_v15, %v2598_v16  ;;  %v2602_v20 = vcombine.high %v2582_v15, %v2598_v16 }
 0xa43   : > { %v2603_v21 = vpack.c.bf16 %v2599_v17, %v2599_v17  ;;  %v2604_v22 = vpack.c.bf16 %v2600_v18, %v2600_v18  ;;  %v2606_v39 = vpack.c.bf16 %v2602_v20, %v2602_v20  ;;  %v2605_v41 = vpack.c.bf16 %v2601_v19, %v2601_v19 }
 0xa45   : > { %v2843_v23 = vsel %vm1604_vm3, %v2603_v21, 0  ;;  %v2889_v24 = vsel %vm1604_vm3, %v2604_v22, 0  ;;  %v2981_v48 = vsel %vm1604_vm3, %v2606_v39, 0 }
 0xa46   : > { %4786 = vmatpush3.bf16.msra.mxu0 %v2843_v23  ;;  %4792 = vmatpush3.bf16.msra.mxu1 %v2889_v24 }
 0xa47   : > { %4797 = vmatprep.subr.bf16.mxu0 %v5413_v0  ;;  %4803 = vmatprep.subr.bf16.mxu1 %v5413_v0 }
 0xa4a   : > { %3178 = vrot.lane.b32.xlu1 %v6006_v58, %s5417_s3 }
 0xa4e   : > { %3181 = vrot.lane.b32.xlu1 %v6006_v58, %s5415_s18 }
 0xa53   : > { %3175 = vrot.lane.b32.xlu0 %v6006_v58, %s5416_s28 }
 0xabe   : > { %v2820_v28 = vpop.xlane.xlu0 %2819 }
 0xabf   : > { %v2817_v29 = vpop.xlane.xlu1 %2816  ;;  %5055 = vrcp.f32 %v2820_v28 }
 0xac0   : > { %5057 = vrcp.f32 %v2817_v29 }
 0xac6   : > { %v2823_v30 = vpop.xlane.xlu1 %2822 }
 0xac7   : > { %5059 = vrcp.f32 %v2823_v30 }
 0xac9   : > { %v5056_v31 = vpop.eup %5055 }
 0xaca   : > { %v5058_v33 = vpop.eup %5057  ;;  %v2832_v35 = vmul.f32 %v5056_v31, %v6114_v32  ;;  %v3179_v25 = vpop.permute.xlu1 %3178  ;;  %v2935_v32 = vsel %vm1604_vm3, %v2605_v41, 0 }
 0xacb   : > { %v2826_v36 = vpop.xlane.xlu0 %2825  ;;  %v2831_v40 = vmul.f32 %v5058_v33, %v6116_v26  ;;  %v3184_v42 = vcombine.low %v6006_v58, %v3179_v25  ;;  %v3185_v44 = vcombine.high %v6006_v58, %v3179_v25 }
 0xacc   : > { %5061 = vrcp.f32 %v2826_v36  ;;  %v2836_v43 = vpack.c.bf16 %v2832_v35, %v2832_v35 }
 0xacd   : > { %v2835_v45 = vpack.c.bf16 %v2831_v40, %v2831_v40  ;;  %v3192_v51 = vrot.slane %v3184_v42, %v5829_v27  ;;  %v3199_v63 = vrot.slane %v3185_v44, %v5829_v27 }
 0xace   : > { %v3182_v46 = vpop.permute.xlu1 %3181  ;;  %4794 = vmatmul.mubr.msk.bf16.vlgmr.msra.gmra.mrb[36].mxu1 %vm1368_vm2, %v2836_v43 }
 0xacf   : > { %v3176_v50 = vpop.permute.xlu0 %3175  ;;  %4788 = vmatmul.mubr.msk.bf16.vlgmr.msra.gmra.mrb[36].mxu0 %vm1368_vm2, %v2835_v45  ;;  %4804 = vmatpush3.bf16.msra.mxu1 %v2981_v48 }
 0xad0   : > { %v3200_v26 = vcombine.low %v3176_v50, %v3182_v46  ;;  %v3201_v37 = vcombine.high %v3176_v50, %v3182_v46  ;;  %4798 = vmatpush3.bf16.msra.mxu0 %v2935_v32  ;;  %4799 = vmatprep.mubr.msk.bf16.mxu0 %vm5414_vm0, %v5413_v0 }
 0xad1   : > { %v5060_v58 = vpop.eup %5059  ;;  %4805 = vmatprep.mubr.msk.bf16.mxu1 %vm5414_vm0, %v5413_v0  ;;  %4809 = vmatprep.subr.bf16.mxu0 %v5413_v0 }
 0xad2   : > { %v3208_v52 = vrot.slane %v3200_v26, %v5829_v27  ;;  %v3215_v55 = vrot.slane %v3201_v37, %v5829_v27  ;;  %v2833_v56 = vmul.f32 %v5060_v58, %v6128_v38  ;;  %4815 = vmatprep.subr.bf16.mxu1 %v5413_v0 }
 0xad4   : > { %v3216_v59 = vcombine.low %v3192_v51, %v3208_v52  ;;  %v3217_v60 = vcombine.high %v3192_v51, %v3208_v52  ;;  %v3232_v49 = vcombine.low %v3199_v63, %v3215_v55  ;;  %v3233_v57 = vcombine.high %v3199_v63, %v3215_v55 }
 0xad5   : > { %v2837_v61 = vpack.c.bf16 %v2833_v56, %v2833_v56 }
 0xad6   : > { %v5062_v1 = vpop.eup %5061  ;;  %v3224_v3 = vrot.slane %v3216_v59, %v5831_v34  ;;  %v3231_v5 = vrot.slane %v3217_v60, %v5831_v34  ;;  %v3240_v6 = vrot.slane %v3232_v49, %v5831_v34  ;;  %v3247_v7 = vrot.slane %v3233_v57, %v5831_v34 }
 0xad7   : > { %v2834_v8 = vmul.f32 %v5062_v1, %v6136_v62  ;;  %4800 = vmatmul.mubr.msk.bf16.vlgmr.msra.gmra.mrb[40].mxu0 %vm1368_vm2, %v2837_v61 }
 0xad8   : > { %v3252_v9 = vcombine.low %v3224_v3, %v3231_v5  ;;  %v4559_v38 = vcombine.high %v3224_v3, %v3231_v5  ;;  %v3268_v11 = vcombine.low %v3240_v6, %v3247_v7  ;;  %v4560_v12 = vcombine.high %v3240_v6, %v3247_v7  ;;  %4811 = vmatprep.mubr.msk.bf16.mxu0 %vm5414_vm0, %v5413_v0 }
 0xad9   : > { %v2838_v13 = vpack.c.bf16 %v2834_v8, %v2834_v8 }
 0xada   : > { %v3259_v14 = vrot.slane %v3252_v9, %v5829_v27  ;;  %v3267_v15 = vrot.slane %v4559_v38, %v5829_v27  ;;  %v3275_v16 = vrot.slane %v3268_v11, %v5829_v27  ;;  %v3283_v17 = vrot.slane %v4560_v12, %v5829_v27 }
 0xadb   : > { %4806 = vmatmul.mubr.msk.bf16.vlgmr.msra.gmra.mrb[40].mxu1 %vm1368_vm2, %v2838_v13 }
 0xadc   : > { %v3284_v62 = vcombine.low %v3259_v14, %v3267_v15  ;;  %v3300_v18 = vcombine.low %v3275_v16, %v3283_v17  ;;  %4817 = vmatprep.mubr.msk.bf16.mxu1 %vm5414_vm0, %v5413_v0  ;;  %v3285_v19 = vcombine.high %v3259_v14, %v3267_v15  ;;  %v3301_v20 = vcombine.high %v3275_v16, %v3283_v17 }
 0xade   : > { %v3292_v21 = vrot.slane %v3284_v62, %v5831_v34  ;;  %v3308_v22 = vrot.slane %v3300_v18, %v5831_v34  ;;  %v3299_v28 = vrot.slane %v3285_v19, %v5831_v34  ;;  %v3315_v29 = vrot.slane %v3301_v20, %v5831_v34 }
 0xae0   : > { %v3316_v23 = vcombine.low %v3292_v21, %v3308_v22  ;;  %v3317_v24 = vcombine.high %v3292_v21, %v3308_v22  ;;  %v3318_v25 = vcombine.low %v3299_v28, %v3315_v29  ;;  %v3319_v36 = vcombine.high %v3299_v28, %v3315_v29 }
 0xae2   : > { %v3320_v30 = vpack.c.bf16 %v3316_v23, %v3316_v23  ;;  %v3321_v31 = vpack.c.bf16 %v3317_v24, %v3317_v24  ;;  %v3322_v39 = vpack.c.bf16 %v3318_v25, %v3318_v25  ;;  %v3323_v40 = vpack.c.bf16 %v3319_v36, %v3319_v36 }
 0xae4   : > { %v3475_v33 = vsel %vm1368_vm2, %v3320_v30, 0  ;;  %v3518_v35 = vsel %vm1368_vm2, %v3321_v31, 0  ;;  %v3561_v41 = vsel %vm1368_vm2, %v3322_v39, 0  ;;  %v3604_v42 = vsel %vm1368_vm2, %v3323_v40, 0 }
 0xae5   : > { %4810 = vmatpush3.bf16.xpose.msra.mxu0 %v3475_v33  ;;  %4816 = vmatpush3.bf16.xpose.msra.mxu1 %v3518_v35 }
 0xae6   : > { %4821 = vmatprep.subr.bf16.mxu0 %v5413_v0  ;;  %4827 = vmatprep.subr.bf16.mxu1 %v5413_v0 }
 0xaec   : > { %4812 = vmatmul.mubr.msk.bf16.vlgmr.msra.gmra.mrb[44].mxu0 %vm1368_vm2, %v6074_v4  ;;  %4818 = vmatmul.mubr.msk.bf16.vlgmr.msra.gmra.mrb[44].mxu1 %vm1368_vm2, %v6076_v47 }
 0xaed   : > { %4822 = vmatpush3.bf16.xpose.msra.mxu0 %v3561_v41  ;;  %4828 = vmatpush3.bf16.xpose.msra.mxu1 %v3604_v42 }
 0xaee   : > { %4823 = vmatprep.mubr.msk.bf16.mxu0 %vm5414_vm0, %v5413_v0  ;;  %4829 = vmatprep.mubr.msk.bf16.mxu1 %vm5414_vm0, %v5413_v0 }
 0xaef   : > { %4833 = vmatprep.subr.bf16.mxu0 %v5413_v0  ;;  %4839 = vmatprep.subr.bf16.mxu1 %v5413_v0 }
 0xaf4   : > { %4824 = vmatmul.mubr.msk.bf16.vlgmr.msra.gmra.mrb[48].mxu0 %vm1368_vm2, %v6092_v53  ;;  %4830 = vmatmul.mubr.msk.bf16.vlgmr.msra.gmra.mrb[48].mxu1 %vm1368_vm2, %v6094_v54 }
 0xaf5   : > { %4835 = vmatprep.mubr.msk.bf16.mxu0 %vm5414_vm0, %v5413_v0  ;;  %4841 = vmatprep.mubr.msk.bf16.mxu1 %vm5414_vm0, %v5413_v0 }
 0xba1   : > { %v2925_v4 = vpop.f32.mrb[36].mxu1 }
 0xba2   : > { %v2879_v47 = vpop.f32.mrb[36].mxu0  ;;  %v4795_v43 = vpop.f32.mrb[37].mxu1 }
 0xba3   : > { %v4789_v44 = vpop.f32.mrb[37].mxu0  ;;  %v2928_v45 = vpop.f32.mrb[38].mxu1 }
 0xba4   : > { %v2882_v46 = vpop.f32.mrb[38].mxu0  ;;  %v4796_v48 = vpop.f32.mrb[39].mxu1 }
 0xba5   : > { %v4790_v50 = vpop.f32.mrb[39].mxu0 }
 0xbaa   : > { %v2971_v32 = vpop.f32.mrb[40].mxu0 }
 0xbab   : > { %v3023_v26 = vcombine.low %v2879_v47, %v2971_v32  ;;  %v3024_v53 = vcombine.high %v2879_v47, %v2971_v32  ;;  %v4801_v37 = vpop.f32.mrb[41].mxu0 }
 0xbac   : > { %v2974_v51 = vpop.f32.mrb[42].mxu0 }
 0xbad   : > { %v4802_v54 = vpop.f32.mrb[43].mxu0  ;;  %v3031_v59 = vrot.slane %v3023_v26, %v5829_v27  ;;  %v3038_v60 = vrot.slane %v3024_v53, %v5829_v27 }
 0xbae   : > { %v3017_v58 = vpop.f32.mrb[40].mxu1 }
 0xbaf   : > { %v3039_v63 = vcombine.low %v2925_v4, %v3017_v58  ;;  %v3040_v52 = vcombine.high %v2925_v4, %v3017_v58  ;;  %v4807_v55 = vpop.f32.mrb[41].mxu1 }
 0xbb0   : > { %v3020_v56 = vpop.f32.mrb[42].mxu1 }
 0xbb1   : > { %v3047_v49 = vrot.slane %v3039_v63, %v5829_v27  ;;  %v3054_v57 = vrot.slane %v3040_v52, %v5829_v27  ;;  %v4808_v61 = vpop.f32.mrb[43].mxu1 }
 0xbb3   : > { %v3055_v1 = vcombine.low %v3031_v59, %v3047_v49  ;;  %v3056_v3 = vcombine.high %v3031_v59, %v3047_v49  ;;  %v3071_v5 = vcombine.low %v3038_v60, %v3054_v57  ;;  %v3072_v6 = vcombine.high %v3038_v60, %v3054_v57 }
 0xbb5   : > { %v3063_v7 = vrot.slane %v3055_v1, %v5831_v34  ;;  %v3070_v8 = vrot.slane %v3056_v3, %v5831_v34  ;;  %v3079_v9 = vrot.slane %v3071_v5, %v5831_v34  ;;  %v3086_v38 = vrot.slane %v3072_v6, %v5831_v34 }
 0xbb7   : > { %v3091_v11 = vcombine.low %v3063_v7, %v3070_v8  ;;  %v4557_v12 = vcombine.high %v3063_v7, %v3070_v8  ;;  %v3107_v13 = vcombine.low %v3079_v9, %v3086_v38  ;;  %v4558_v14 = vcombine.high %v3079_v9, %v3086_v38 }
 0xbb9   : > { %v3098_v15 = vrot.slane %v3091_v11, %v5829_v27  ;;  %v3106_v16 = vrot.slane %v4557_v12, %v5829_v27  ;;  %v3114_v17 = vrot.slane %v3107_v13, %v5829_v27  ;;  %v3122_v62 = vrot.slane %v4558_v14, %v5829_v27 }
 0xbbb   : > { %v3124_v18 = vcombine.high %v3098_v15, %v3106_v16  ;;  %v3140_v19 = vcombine.high %v3114_v17, %v3122_v62  ;;  %v3123_v20 = vcombine.low %v3098_v15, %v3106_v16  ;;  %v3139_v21 = vcombine.low %v3114_v17, %v3122_v62 }
 0xbbd   : > { %v6233_v22 = vrot.slane %v3124_v18, %v5831_v34  ;;  %v6236_v23 = vrot.slane %v3140_v19, %v5831_v34  ;;  %v6239_v24 = vrot.slane %v3123_v20, %v5831_v34  ;;  %v6242_v28 = vrot.slane %v3139_v21, %v5831_v34 }
 0xbbf   : > { %v3511_v29 = vpop.f32.mrb[44].mxu0  ;;  %v3554_v30 = vpop.f32.mrb[44].mxu1  ;;  %v3157_v31 = vcombine.low %v6233_v22, %v6236_v23  ;;  %v3156_v33 = vcombine.high %v6239_v24, %v6242_v28  ;;  %v3155_v35 = vcombine.low %v6239_v24, %v6242_v28  ;;  %v3158_v25 = vcombine.high %v6233_v22, %v6236_v23 }
 0xbc0   : > { %v4813_v36 = vpop.f32.mrb[45].mxu0  ;;  %v4819_v39 = vpop.f32.mrb[45].mxu1  ;;  %v3649_v40 = vsel %vm1368_vm2, %v3554_v30, -inf  ;;  %v3646_v41 = vsel %vm1368_vm2, %v3511_v29, -inf }
 0xbc1   : > { %3650 = vmax.xlane.f32.xlu1 %v3649_v40  ;;  %v3557_v42 = vpop.f32.mrb[46].mxu1  ;;  %3647 = vmax.xlane.f32.xlu0 %v3646_v41  ;;  %v3514_v4 = vpop.f32.mrb[46].mxu0 }
 0xbc2   : > { %v4814_v47 = vpop.f32.mrb[47].mxu0  ;;  %v4820_v43 = vpop.f32.mrb[47].mxu1 }
 0xbc7   : > { %v3597_v44 = vpop.f32.mrb[48].mxu0  ;;  %v3640_v45 = vpop.f32.mrb[48].mxu1 }
 0xbc8   : > { %v4825_v46 = vpop.f32.mrb[49].mxu0  ;;  %v4831_v48 = vpop.f32.mrb[49].mxu1  ;;  %v3652_v50 = vsel %vm1368_vm2, %v3597_v44, -inf  ;;  %v3655_v51 = vsel %vm1368_vm2, %v3640_v45, -inf }
 0xbc9   : > { %v3643_v32 = vpop.f32.mrb[50].mxu1  ;;  %3653 = vmax.xlane.f32.xlu0 %v3652_v50  ;;  %v3600_v26 = vpop.f32.mrb[50].mxu0 }
 0xbca   : > { %v4826_v53 = vpop.f32.mrb[51].mxu0  ;;  %v4832_v37 = vpop.f32.mrb[51].mxu1 }
 0xbcd   : > { %3656 = vmax.xlane.f32.xlu0 %v3655_v51 }
 0xbd2   : > { %3325 = vrot.lane.b32.xlu1 %v6054_v2, %s5416_s28 }
 0xc4e   : > { %v3651_v54 = vpop.xlane.xlu1 %3650  ;;  %v3648_v58 = vpop.xlane.xlu0 %3647 }
 0xc4f   : > { %v3659_v63 = vsub.f32 %v3554_v30, %v3651_v54  ;;  %v3658_v52 = vsub.f32 %v3511_v29, %v3648_v58 }
 0xc51   : > { %v3664_v55 = vmul.f32 1.442695, %v3659_v63  ;;  %v3662_v56 = vmul.f32 1.442695, %v3658_v52 }
 0xc52   : > { %v3326_v12 = vpop.permute.xlu1 %3325 }
 0xc53   : > { %5063 = vpow2.f32 %v3664_v55 }
 0xc54   : > { %5065 = vpow2.f32 %v3662_v56 }
 0xc56   : > { %v3654_v61 = vpop.xlane.xlu0 %3653 }
 0xc57   : > { %v3660_v5 = vsub.f32 %v3597_v44, %v3654_v61 }
 0xc59   : > { %v3666_v7 = vmul.f32 1.442695, %v3660_v5 }
 0xc5a   : > { %v3657_v1 = vpop.xlane.xlu0 %3656 }
 0xc5b   : > { %v3661_v3 = vsub.f32 %v3640_v45, %v3657_v1 }
 0xc5d   : > { %v6258_v59 = vpop.eup %5063  ;;  %v3668_v6 = vmul.f32 1.442695, %v3661_v3 }
 0xc5e   : > { %v6260_v60 = vpop.eup %5065  ;;  %v3673_v49 = vsel %vm1368_vm2, %v6258_v59, 0.0 }
 0xc5f   : > { %v3670_v57 = vsel %vm1368_vm2, %v6260_v60, 0.0  ;;  %3674 = vadd.xlane.f32.xlu0 %v3673_v49  ;;  %5067 = vpow2.f32 %v3668_v6 }
 0xc60   : > { %3671 = vadd.xlane.f32.xlu1 %v3670_v57  ;;  %5069 = vpow2.f32 %v3666_v7 }
 0xc69   : > { %v6270_v8 = vpop.eup %5067 }
 0xc6a   : > { %v6272_v9 = vpop.eup %5069  ;;  %v3679_v38 = vsel %vm1368_vm2, %v6270_v8, 0.0 }
 0xc6b   : > { %v3676_v11 = vsel %vm1368_vm2, %v6272_v9, 0.0 }
 0xc71   : > { %3331 = vrot.lane.b32.xlu1 %v6054_v2, %s5415_s18  ;;  %s5325_s18 = scalar_lea.vmem %s5324_s27, 256 }
 0xc75   : > { %3328 = vrot.lane.b32.xlu0 %v6054_v2, %s5417_s3  ;;  %s6524_s3 = sld [smem:[#allocation38_spill]] }
 0xc94   : > { %3680 = vadd.xlane.f32.xlu0 %v3679_v38 }
 0xc95   : > { %3677 = vadd.xlane.f32.xlu1 %v3676_v11 }
 0xca6   : > { %3164 = vrot.lane.b32.xlu1 %v3157_v31, %s5420_s24 }
 0xcaa   : > { %3160 = vrot.lane.b32.xlu0 %v3156_v33, %s5421_s20 }
 0xcec   : > { %v3675_v13 = vpop.xlane.xlu0 %3674 }
 0xced   : > { %v3672_v14 = vpop.xlane.xlu1 %3671  ;;  %5071 = vrcp.f32 %v3675_v13 }
 0xcee   : > { %5073 = vrcp.f32 %v3672_v14 }
 0xcf0   : > { %v3329_v15 = vpop.permute.xlu0 %3328 }
 0xcf1   : > { %v3332_v16 = vpop.permute.xlu1 %3331  ;;  %v3334_v17 = vcombine.low %v6054_v2, %v3329_v15  ;;  %v3335_v62 = vcombine.high %v6054_v2, %v3329_v15 }
 0xcf2   : > { %v3350_v18 = vcombine.low %v3326_v12, %v3332_v16  ;;  %v3351_v19 = vcombine.high %v3326_v12, %v3332_v16 }
 0xcf3   : > { %v3342_v20 = vrot.slane %v3334_v17, %v5829_v27  ;;  %v3349_v21 = vrot.slane %v3335_v62, %v5829_v27 }
 0xcf4   : > { %v3358_v29 = vrot.slane %v3350_v18, %v5829_v27  ;;  %v3365_v30 = vrot.slane %v3351_v19, %v5829_v27 }
 0xcf6   : > { %v3366_v31 = vcombine.low %v3342_v20, %v3358_v29  ;;  %v3367_v33 = vcombine.high %v3342_v20, %v3358_v29  ;;  %v3382_v36 = vcombine.low %v3349_v21, %v3365_v30  ;;  %v3383_v39 = vcombine.high %v3349_v21, %v3365_v30 }
 0xcf7   : > { %v5072_v58 = vpop.eup %5071 }
 0xcf8   : > { %v3374_v40 = vrot.slane %v3366_v31, %v5831_v34  ;;  %v3381_v2 = vrot.slane %v3367_v33, %v5831_v34  ;;  %v3390_v41 = vrot.slane %v3382_v36, %v5831_v34  ;;  %v3397_v42 = vrot.slane %v3383_v39, %v5831_v34  ;;  %v5074_v55 = vpop.eup %5073 }
 0xcf9   : > { %v3686_v1 = vmul.f32 %v5074_v55, %v6260_v60  ;;  %v3687_v3 = vmul.f32 %v5072_v58, %v6258_v59 }
 0xcfa   : > { %v3402_v4 = vcombine.low %v3374_v40, %v3381_v2  ;;  %v4561_v47 = vcombine.high %v3374_v40, %v3381_v2  ;;  %v3418_v43 = vcombine.low %v3390_v41, %v3397_v42  ;;  %v4562_v44 = vcombine.high %v3390_v41, %v3397_v42 }
 0xcfb   : > { %v3690_v13 = vpack.c.bf16 %v3686_v1, %v3686_v1  ;;  %v3691_v14 = vpack.c.bf16 %v3687_v3, %v3687_v3 }
 0xcfc   : > { %v3409_v45 = vrot.slane %v3402_v4, %v5829_v27  ;;  %v3417_v46 = vrot.slane %v4561_v47, %v5829_v27  ;;  %v3425_v48 = vrot.slane %v3418_v43, %v5829_v27  ;;  %v3433_v50 = vrot.slane %v4562_v44, %v5829_v27 }
 0xcfe   : > { %v3434_v32 = vcombine.low %v3409_v45, %v3417_v46  ;;  %v3435_v26 = vcombine.high %v3409_v45, %v3417_v46  ;;  %v3450_v53 = vcombine.low %v3425_v48, %v3433_v50  ;;  %v3451_v37 = vcombine.high %v3425_v48, %v3433_v50 }
 0xd00   : > { %v3442_v51 = vrot.slane %v3434_v32, %v5831_v34  ;;  %v3449_v54 = vrot.slane %v3435_v26, %v5831_v34  ;;  %v3458_v63 = vrot.slane %v3450_v53, %v5831_v34  ;;  %v3465_v52 = vrot.slane %v3451_v37, %v5831_v34 }
 0xd02   : > { %v3466_v56 = vcombine.low %v3442_v51, %v3458_v63  ;;  %v3467_v49 = vcombine.high %v3442_v51, %v3458_v63  ;;  %v3468_v57 = vcombine.low %v3449_v54, %v3465_v52  ;;  %v3469_v61 = vcombine.high %v3449_v54, %v3465_v52 }
 0xd04   : > { %v3470_v5 = vpack.c.bf16 %v3466_v56, %v3466_v56  ;;  %v3471_v6 = vpack.c.bf16 %v3467_v49, %v3467_v49  ;;  %v3472_v11 = vpack.c.bf16 %v3468_v57, %v3468_v57  ;;  %v3473_v12 = vpack.c.bf16 %v3469_v61, %v3469_v61 }
 0xd06   : > { %v3698_v7 = vsel %vm1604_vm3, %v3470_v5, 0  ;;  %v3744_v38 = vsel %vm1604_vm3, %v3471_v6, 0  ;;  %v3790_v59 = vsel %vm1604_vm3, %v3472_v11, 0  ;;  %v3836_v60 = vsel %vm1604_vm3, %v3473_v12, 0 }
 0xd07   : > { %4834 = vmatpush3.bf16.msra.mxu0 %v3698_v7  ;;  %4840 = vmatpush3.bf16.msra.mxu1 %v3744_v38 }
 0xd08   : > { %4845 = vmatprep.subr.bf16.mxu0 %v5413_v0  ;;  %4851 = vmatprep.subr.bf16.mxu1 %v5413_v0 }
 0xd0a   : > { %4836 = vmatmul.mubr.msk.bf16.vlgmr.msra.gmra.mrb[52].mxu0 %vm1368_vm2, %v3690_v13  ;;  %4842 = vmatmul.mubr.msk.bf16.vlgmr.msra.gmra.mrb[52].mxu1 %vm1368_vm2, %v3691_v14 }
 0xd0b   : > { %4846 = vmatpush3.bf16.msra.mxu0 %v3790_v59  ;;  %4852 = vmatpush3.bf16.msra.mxu1 %v3836_v60 }
 0xd0c   : > { %4847 = vmatprep.mubr.msk.bf16.mxu0 %vm5414_vm0, %v5413_v0  ;;  %4853 = vmatprep.mubr.msk.bf16.mxu1 %vm5414_vm0, %v5413_v0 }
 0xd0d   : > { %4857 = vmatprep.subr.bf16.mxu0 %v5413_v0  ;;  %4865 = vmatprep.subr.bf16.mxu1 %v5413_v0 }
 0xd21   : > { %v3681_v15 = vpop.xlane.xlu0 %3680 }
 0xd22   : > { %v3678_v16 = vpop.xlane.xlu1 %3677  ;;  %5075 = vrcp.f32 %v3681_v15 }
 0xd23   : > { %5077 = vrcp.f32 %v3678_v16 }
 0xd2c   : > { %v5076_v17 = vpop.eup %5075 }
 0xd2d   : > { %v5078_v62 = vpop.eup %5077  ;;  %v3689_v18 = vmul.f32 %v5076_v17, %v6270_v8 }
 0xd2e   : > { %v3688_v19 = vmul.f32 %v5078_v62, %v6272_v9 }
 0xd2f   : > { %v3693_v20 = vpack.c.bf16 %v3689_v18, %v3689_v18 }
 0xd30   : > { %v3692_v21 = vpack.c.bf16 %v3688_v19, %v3688_v19 }
 0xd31   : > { %4854 = vmatmul.mubr.msk.bf16.vlgmr.msra.gmra.mrb[56].mxu1 %vm1368_vm2, %v3693_v20  ;;  %v3161_v20 = vpop.permute.xlu0 %3160 }
 0xd32   : > { %4848 = vmatmul.mubr.msk.bf16.vlgmr.msra.gmra.mrb[56].mxu0 %vm1368_vm2, %v3692_v21  ;;  %4873 = vmatprep.mubr.msk.bf16.mxu1 %vm5414_vm0, %v5413_v0 }
 0xd33   : > { %4861 = vmatprep.mubr.msk.bf16.mxu0 %vm5414_vm0, %v5413_v0 }
 0xddd   : > { %v3734_v29 = vpop.f32.mrb[52].mxu0  ;;  %v3780_v30 = vpop.f32.mrb[52].mxu1 }
 0xdde   : > { %v4837_v31 = vpop.f32.mrb[53].mxu0  ;;  %v4843_v33 = vpop.f32.mrb[53].mxu1 }
 0xddf   : > { %v3737_v36 = vpop.f32.mrb[54].mxu0  ;;  %v3783_v8 = vpop.f32.mrb[54].mxu1 }
 0xde0   : > { %v4838_v39 = vpop.f32.mrb[55].mxu0  ;;  %v4844_v9 = vpop.f32.mrb[55].mxu1 }
 0xe04   : > { %v3872_v40 = vpop.f32.mrb[56].mxu1 }
 0xe05   : > { %v3826_v2 = vpop.f32.mrb[56].mxu0  ;;  %v3894_v41 = vcombine.low %v3780_v30, %v3872_v40  ;;  %v3895_v42 = vcombine.high %v3780_v30, %v3872_v40  ;;  %v4855_v4 = vpop.f32.mrb[57].mxu1 }
 0xe06   : > { %v3878_v47 = vcombine.low %v3734_v29, %v3826_v2  ;;  %v3879_v43 = vcombine.high %v3734_v29, %v3826_v2  ;;  %v4849_v44 = vpop.f32.mrb[57].mxu0  ;;  %v3875_v45 = vpop.f32.mrb[58].mxu1 }
 0xe07   : > { %v3902_v46 = vrot.slane %v3894_v41, %v5829_v27  ;;  %v3909_v48 = vrot.slane %v3895_v42, %v5829_v27  ;;  %v3829_v50 = vpop.f32.mrb[58].mxu0  ;;  %v4856_v32 = vpop.f32.mrb[59].mxu1  ;;  %v5022_v45 = vld [vmem:[%s6460_s13 + $0x8] sm:$0xff]  }
 0xe08   : > { %v3886_v26 = vrot.slane %v3878_v47, %v5829_v27  ;;  %v3893_v53 = vrot.slane %v3879_v43, %v5829_v27  ;;  %v4850_v37 = vpop.f32.mrb[59].mxu0 }
 0xe0a   : > { %v3910_v51 = vcombine.low %v3886_v26, %v3902_v46  ;;  %v3911_v54 = vcombine.high %v3886_v26, %v3902_v46  ;;  %v3926_v58 = vcombine.low %v3893_v53, %v3909_v48  ;;  %v3927_v63 = vcombine.high %v3893_v53, %v3909_v48  ;;  %v5023_v46 = vld [vmem:[%s6462_s15] sm:$0xff]   ;;  %v5024_v48 = vld [vmem:[%s6462_s15 + $0x8] sm:$0xff]  }
 0xe0b   : > { %4866 = vmatpush3.bf16.msra.mxu1 %v5023_v46 }
 0xe0c   : > { %v3918_v52 = vrot.slane %v3910_v51, %v5831_v34  ;;  %v3925_v55 = vrot.slane %v3911_v54, %v5831_v34  ;;  %v3934_v56 = vrot.slane %v3926_v58, %v5831_v34  ;;  %v3941_v49 = vrot.slane %v3927_v63, %v5831_v34  ;;  %4867 = vmatprep.subr.bf16.mxu1 %v5413_v0 }
 0xe0e   : > { %v3946_v57 = vcombine.low %v3918_v52, %v3925_v55  ;;  %v4571_v61 = vcombine.high %v3918_v52, %v3925_v55  ;;  %v3962_v1 = vcombine.low %v3934_v56, %v3941_v49  ;;  %v4572_v3 = vcombine.high %v3934_v56, %v3941_v49 }
 0xe0f   : > { %4868 = vmatpush3.bf16.msra.mxu1 %v5024_v48 }
 0xe10   : > { %v3953_v5 = vrot.slane %v3946_v57, %v5829_v27  ;;  %v3961_v6 = vrot.slane %v4571_v61, %v5829_v27  ;;  %v3969_v7 = vrot.slane %v3962_v1, %v5829_v27  ;;  %v3977_v38 = vrot.slane %v4572_v3, %v5829_v27  ;;  %v3165_v27 = vpop.permute.xlu1 %3164  ;;  %4869 = vmatprep.subr.bf16.mxu1 %v5413_v0 }
 0xe12   : > { %v3979_v11 = vcombine.high %v3953_v5, %v3961_v6  ;;  %v3995_v12 = vcombine.high %v3969_v7, %v3977_v38  ;;  %v3978_v13 = vcombine.low %v3953_v5, %v3961_v6  ;;  %v3994_v14 = vcombine.low %v3969_v7, %v3977_v38  ;;  %v4573_v5 = vld [vmem:[#allocation13] ss:$0 sm:$0xff]  ;;  %v4574_v38 = vld [vmem:[#allocation14] ss:$0 sm:$0xff] }
 0xe14   : > { %v3993_v59 = vrot.slane %v3979_v11, %v5831_v34  ;;  %v4009_v60 = vrot.slane %v3995_v12, %v5831_v34  ;;  %v3986_v15 = vrot.slane %v3978_v13, %v5831_v34  ;;  %v4002_v16 = vrot.slane %v3994_v14, %v5831_v34 }
 0xe15   : > { %v3171_v34 = vsel %vm1368_vm2, %v3155_v35, %v3161_v20 }
 0xe16   : > { %v4012_v17 = vcombine.low %v3993_v59, %v4009_v60  ;;  %v4011_v62 = vcombine.high %v3986_v15, %v4002_v16  ;;  %v4013_v18 = vcombine.high %v3993_v59, %v4009_v60  ;;  %v4010_v19 = vcombine.low %v3986_v15, %v4002_v16  ;;  %v5025_v15 = vld [vmem:[%s6462_s15 + $0x10] sm:$0xff]   ;;  %v5026_v16 = vld [vmem:[%s6462_s15 + $0x18] sm:$0xff]  }
 0xe17   : > { %v3172_v36 = vsel %vm1935_vm4, %v3171_v34, %v3165_v27  ;;  %4870 = vmatpush3.bf16.msra.mxu1 %v5025_v15 }
 0xe18   : > { %4019 = vrot.lane.b32.xlu0 %v4012_v17, %s5420_s24  ;;  %4015 = vrot.lane.b32.xlu1 %v4011_v62, %s5421_s20  ;;  %v4575_v17 = vld [vmem:[%s6461_s14] ss:$0 sm:$0xff]  ;;  %s4503_s24 = sshll.u32 %s728_s17, 3 }
 0xe19   : > { %4871 = vmatprep.subr.bf16.mxu1 %v5413_v0  ;;  %s730_s23 = scalar_lea.vmem [#allocation16], %s4503_s24 }
 0xe1a   : > { %s4321_s25 = sshll.u32 %s730_s23, 4  ;;  %s6406_s25 = int_to_ptr.vmem [resolvable:$true] %s4321_s25 }
 0xe1b   : > { %4872 = vmatpush3.bf16.msra.mxu1 %v5026_v16  ;;  %p5326_p0 = scmp.lt.s32.totalorder %s6406_s25, %s5324_s27 }
 0xe1c   : > { %4023 = vrot.lane.b32.xlu0 %v4013_v18, %s5422_s7  ;;  %3168 = vrot.lane.b32.xlu1 %v3158_v25, %s5422_s7 }
 0xe8a   : > { %v4020_v21 = vpop.permute.xlu0 %4019  ;;  %v4016_v29 = vpop.permute.xlu1 %4015 }
 0xe8b   : > { %v4026_v30 = vsel %vm1368_vm2, %v4010_v19, %v4016_v29 }
 0xe8c   : > { %v4027_v33 = vsel %vm1935_vm4, %v4026_v30, %v4020_v21 }
 0xe8e   : > { %v4024_v31 = vpop.permute.xlu0 %4023  ;;  %v3169_v8 = vpop.permute.xlu1 %3168 }
 0xe8f   : > { %v4028_v22 = vsel %vm1937_vm5, %v4027_v33, %v4024_v31  ;;  %v3173_v23 = vsel %vm1937_vm5, %v3172_v36, %v3169_v8 }
 0xe90   : > { %v4029_v25 = vadd.f32 %v3173_v23, %v6012_v10  ;;  %v4030_v39 = vadd.f32 %v4028_v22, %v6012_v10  ;;  %v5021_v10 = vld [vmem:[%s6460_s13] sm:$0xff]  }
 0xe91   : > { %4858 = vmatpush3.bf16.msra.mxu0 %v5021_v10 }
 0xe92   : > { %v4033_v24 = vsel %vm762_vm1, %v4029_v25, 0.0  ;;  %v4036_v28 = vsel %vm762_vm1, %v4030_v39, 0.0  ;;  %4859 = vmatprep.subr.bf16.mxu0 %v5413_v0  ;;  %v4579_v0 = vld [vmem:[%s6522_s4] ss:$0 sm:$0xff]  ;;  %s5319_s4 = scalar_lea.vmem %s6406_s25, 128 }
 0xe93   : > { %4034 = vadd.xlane.f32.xlu1 %v4033_v24  ;;  %4037 = vadd.xlane.f32.xlu0 %v4036_v28  ;;  %p5320_p6 = scmp.ne.s32.totalorder %s6406_s25, %s5319_s4  ;;  %p5327_p2 = scmp.lt.s32.totalorder %s5325_s18, %s5319_s4 }
 0xe95   : > { %4860 = vmatpush3.bf16.msra.mxu0 %v5022_v45  ;;  %p5321_p5 = pnand %p5320_p6, %p6528_p9  ;;  %p5328_p3 = por %p5327_p2, %p5326_p0 }
 0xe97   : > { %p5322_p10 = pneg %p5321_p5 }
 0xe99   : > { %p5329_p4 = pnand %p5328_p3, %p5322_p10 }
 0xf20   : > { %v4035_v35 = vpop.xlane.xlu1 %4034  ;;  %v4038_v9 = vpop.xlane.xlu0 %4037 }
 0xf21   : > { %v4039_v40 = vmul.f32 0.03125, %v4035_v35  ;;  %v4040_v2 = vmul.f32 0.03125, %v4038_v9 }
 0xf23   : > { %v4041_v41 = vsub.f32 %v4029_v25, %v4039_v40  ;;  %v4042_v42 = vsub.f32 %v4030_v39, %v4040_v2 }
 0xf25   : > { %v4043_v4 = vmul.f32 %v4041_v41, %v4041_v41  ;;  %v4044_v47 = vmul.f32 %v4042_v42, %v4042_v42 }
 0xf27   : > { %v4045_v43 = vsel %vm762_vm1, %v4043_v4, 0.0  ;;  %v4048_v44 = vsel %vm762_vm1, %v4044_v47, 0.0 }
 0xf28   : > { %4046 = vadd.xlane.f32.xlu0 %v4045_v43  ;;  %4049 = vadd.xlane.f32.xlu1 %v4048_v44 }
 0xfb5   : > { %v4050_v50 = vpop.xlane.xlu1 %4049  ;;  %v4047_v32 = vpop.xlane.xlu0 %4046 }
 0xfb6   : > { %v4052_v26 = vmul.f32 0.032258064, %v4050_v50  ;;  %v4051_v53 = vmul.f32 0.032258064, %v4047_v32 }
 0xfb8   : > { %5079 = vrsqrt.f32 %v4052_v26  ;;  %vm4062_vm8 = vcmp.eq.f32.partialorder %v4052_v26, inf  ;;  %v4065_v58 = vand.u32 2147483648, %v4052_v26  ;;  %vm4064_vm9 = vcmp.eq.f32.partialorder %v4052_v26, 0.0 }
 0xfb9   : > { %5081 = vrsqrt.f32 %v4051_v53  ;;  %vm4055_vm10 = vcmp.eq.f32.partialorder %v4051_v53, inf  ;;  %v4058_v55 = vand.u32 2147483648, %v4051_v53  ;;  %vm4057_vm11 = vcmp.eq.f32.partialorder %v4051_v53, 0.0 }
 0xfc2   : > { %v5080_v37 = vpop.eup %5079 }
 0xfc3   : > { %v5082_v51 = vpop.eup %5081  ;;  %v4061_v54 = vmul.f32 %v5080_v37, %v4052_v26 }
 0xfc4   : > { %v4054_v63 = vmul.f32 %v5082_v51, %v4051_v53 }
 0xfc5   : > { %v4063_v52 = vsel %vm4062_vm8, %v4052_v26, %v4061_v54 }
 0xfc6   : > { %v4066_v56 = vsel %vm4064_vm9, %v4065_v58, %v4063_v52  ;;  %v4056_v49 = vsel %vm4055_vm10, %v4051_v53, %v4054_v63 }
 0xfc7   : > { %v4068_v57 = vadd.f32 0.001, %v4066_v56  ;;  %v4059_v61 = vsel %vm4057_vm11, %v4058_v55, %v4056_v49 }
 0xfc8   : > { %v4067_v1 = vadd.f32 0.001, %v4059_v61 }
 0xfc9   : > { %5083 = vrcp.f32 %v4068_v57  ;;  %v4585_v57 = vld [vmem:[%s6524_s3] ss:$0 sm:$0xff] }
 0xfca   : > { %5085 = vrcp.f32 %v4067_v1 }
 0xfd3   : > { %v5084_v3 = vpop.eup %5083 }
 0xfd4   : > { %v5086_v6 = vpop.eup %5085  ;;  %v4072_v7 = vmul.f32 %v5084_v3, %v4042_v42 }
 0xfd5   : > { %v4071_v11 = vmul.f32 %v5086_v6, %v4041_v41  ;;  %v4586_v6 = vld [vmem:[%s6525_s30] ss:$0 sm:$0xff] }
 0xfd6   : > { %v4080_v12 = vmul.f32 %v4573_v5, %v4072_v7 }
 0xfd7   : > { %v4079_v13 = vmul.f32 %v4573_v5, %v4071_v11 }
 0xfd8   : > { %v4088_v14 = vadd.f32 %v4574_v38, %v4080_v12 }
 0xfd9   : > { %v4087_v59 = vadd.f32 %v4574_v38, %v4079_v13 }
 0xfdb   : > { %v4089_v60 = vpack.c.bf16 %v4088_v14, %v4087_v59 }
 0xfdd   : > { %4862 = vmatmul.mubr.msk.bf16.vlgmr.msra.gmra.mrb[60].mxu0 %vm762_vm1, %v4089_v60 }
0x10b0   : > { %v4150_v62 = vpop.f32.mrb[60].mxu0 }
0x10b1   : > { %v4151_v18 = vadd.f32 %v4575_v17, %v4150_v62  ;;  %v4863_v19 = vpop.f32.mrb[61].mxu0 }
0x10b2   : > { %v4153_v27 = vpop.f32.mrb[62].mxu0 }
0x10b3   : > { %v4154_v20 = vadd.f32 %v4575_v17, %v4153_v27  ;;  %v4864_v21 = vpop.f32.mrb[63].mxu0  ;;  %v4157_v29 = vmax.f32 %v4151_v18, 0.0 }
0x10b5   : > { %v4158_v34 = vmax.f32 %v4154_v20, 0.0 }
0x10b7   : > { %v4159_v30 = vpack.c.bf16 %v4158_v34, %v4157_v29 }
0x10b9   : > { %4874 = vmatmul.mubr.msk.bf16.vlgmr.msra.gmra.mrb[60].mxu1 %vm4199_vm12, %v4159_v30 }
0x118c   : > { %v4237_v31 = vpop.f32.mrb[60].mxu1 }
0x118d   : > { %v4238_v33 = vadd.f32 %v4579_v0, %v4237_v31  ;;  %v4875_v36 = vpop.f32.mrb[61].mxu1 }
0x118e   : > { %v4240_v8 = vpop.f32.mrb[62].mxu1 }
0x118f   : > { %v4241_v22 = vadd.f32 %v4579_v0, %v4240_v8  ;;  %v4876_v23 = vpop.f32.mrb[63].mxu1  ;;  %v4244_v25 = vadd.f32 %v4238_v33, %v4087_v59 }
0x1191   : > { %v4248_v39 = vsel %vm762_vm1, %v4244_v25, 0.0  ;;  %v4245_v24 = vadd.f32 %v4241_v22, %v4088_v14 }
0x1192   : > { %4249 = vadd.xlane.f32.xlu0 %v4248_v39 }
0x1193   : > { %v4251_v28 = vsel %vm762_vm1, %v4245_v24, 0.0 }
0x1194   : > { %4252 = vadd.xlane.f32.xlu1 %v4251_v28 }
0x121f   : > { %v4250_v35 = vpop.xlane.xlu0 %4249 }
0x1220   : > { %v4254_v9 = vmul.f32 0.03125, %v4250_v35 }
0x1221   : > { %v4253_v40 = vpop.xlane.xlu1 %4252 }
0x1222   : > { %v4256_v2 = vsub.f32 %v4244_v25, %v4254_v9  ;;  %v4255_v41 = vmul.f32 0.03125, %v4253_v40 }
0x1224   : > { %v4257_v42 = vsub.f32 %v4245_v24, %v4255_v41  ;;  %v4258_v4 = vmul.f32 %v4256_v2, %v4256_v2 }
0x1226   : > { %v4260_v47 = vsel %vm762_vm1, %v4258_v4, 0.0  ;;  %v4259_v43 = vmul.f32 %v4257_v42, %v4257_v42 }
0x1227   : > { %4261 = vadd.xlane.f32.xlu0 %v4260_v47 }
0x1228   : > { %v4263_v44 = vsel %vm762_vm1, %v4259_v43, 0.0 }
0x1229   : > { %4264 = vadd.xlane.f32.xlu1 %v4263_v44 }
0x12b4   : > { %v4262_v10 = vpop.xlane.xlu0 %4261 }
0x12b5   : > { %v4266_v45 = vmul.f32 0.032258064, %v4262_v10 }
0x12b6   : > { %v4265_v46 = vpop.xlane.xlu1 %4264 }
0x12b7   : > { %5087 = vrsqrt.f32 %v4266_v45  ;;  %v4267_v48 = vmul.f32 0.032258064, %v4265_v46  ;;  %vm4270_vm13 = vcmp.eq.f32.partialorder %v4266_v45, inf  ;;  %v4273_v26 = vand.u32 2147483648, %v4266_v45 }
0x12b8   : > { %vm4272_vm14 = vcmp.eq.f32.partialorder %v4266_v45, 0.0 }
0x12b9   : > { %5089 = vrsqrt.f32 %v4267_v48  ;;  %vm4277_vm15 = vcmp.eq.f32.partialorder %v4267_v48, inf  ;;  %v4280_v63 = vand.u32 2147483648, %v4267_v48  ;;  %vm4279_vm0 = vcmp.eq.f32.partialorder %v4267_v48, 0.0 }
0x12c1   : > { %v5088_v50 = vpop.eup %5087 }
0x12c2   : > { %v4269_v32 = vmul.f32 %v5088_v50, %v4266_v45 }
0x12c3   : > { %v5090_v53 = vpop.eup %5089 }
0x12c4   : > { %v4271_v37 = vsel %vm4270_vm13, %v4266_v45, %v4269_v32  ;;  %v4276_v54 = vmul.f32 %v5090_v53, %v4267_v48 }
0x12c5   : > { %v4274_v51 = vsel %vm4272_vm14, %v4273_v26, %v4271_v37 }
0x12c6   : > { %v4282_v58 = vadd.f32 0.001, %v4274_v51  ;;  %v4278_v52 = vsel %vm4277_vm15, %v4267_v48, %v4276_v54 }
0x12c7   : > { %v4281_v55 = vsel %vm4279_vm0, %v4280_v63, %v4278_v52 }
0x12c8   : > { %5091 = vrcp.f32 %v4282_v58  ;;  %v4283_v56 = vadd.f32 0.001, %v4281_v55 }
0x12ca   : > { %5093 = vrcp.f32 %v4283_v56 }
0x12d2   : > { %v5092_v49 = vpop.eup %5091 }
0x12d3   : > { %v4286_v61 = vmul.f32 %v5092_v49, %v4256_v2 }
0x12d4   : > { %v5094_v1 = vpop.eup %5093 }
0x12d5   : > { %v4287_v3 = vmul.f32 %v5094_v1, %v4257_v42  ;;  %v4294_v5 = vmul.f32 %v4585_v57, %v4286_v61 }
0x12d7   : > { %v4295_v7 = vmul.f32 %v4585_v57, %v4287_v3  ;;  %v4302_v38 = vadd.f32 %v4586_v6, %v4294_v5 }
0x12d9   : > { %v4303_v11 = vadd.f32 %v4586_v6, %v4295_v7 }
0x12db   : > { %v4304_v12 = vadd.f32 %v4303_v11, %v4302_v38 }
0x12dd   : > { %v4305_v13 = vmul.f32 0.5, %v4304_v12 }
0x12df   : > { %4306 = vst.msk [vmem:[%s730_s23] sm:$0xff] %vm762_vm1, %v4305_v13 }
0x12e0   : > { %5332 = shalt.err (!%p5329_p4)
}
0x12e1   : > { %s5333_s17 = scalar_lea.hbm %s6404_s2, 128  ;;  %s5337_s24 = scalar_lea.hbm %s6527_s22, 256 }
0x12e2   : > { %p5334_p12 = scmp.ne.s32.totalorder %s6404_s2, %s5333_s17  ;;  %p5338_p11 = scmp.lt.u32.totalorder %s6404_s2, %s6527_s22 }
0x12e3   : > { %p5339_p13 = scmp.lt.u32.totalorder %s5337_s24, %s5333_s17  ;;  %p5341_p6 = scmp.lt.u32.totalorder %s5333_s17, %s6404_s2 }
0x12e4   : > { %p5335_p7 = pnand %p5334_p12, %p6528_p9 }
0x12e5   : > { %p5340_p1 = por %p5339_p13, %p5338_p11 }
0x12e6   : > { %p5336_p8 = pneg %p5335_p7 }
0x12e7   : > { %p5342_p5 = por %p5341_p6, %p5340_p1 }
0x12e9   : > { %p5343_p10 = pnand %p5342_p5, %p5336_p8 }
0x12eb   : > { %5346 = shalt.err (!%p5343_p10)
}
0x12ec   : > { %4909 = dma.vmem_to_hbm [thread:$0]  (%p6528_p9), %s6406_s25, 128, %s6404_s2, %s4308_s0  }
0x12ed PF: > { %s6529_s30 = sld [smem:[#allocation26_spill]]  ;;  %s6530_s16 = sld [smem:[#allocation23_spill]] }
0x12ee   : > { %s6531_s23 = sld [smem:[#allocation30_spill]] }
0x12f3   : > { %p4956_p0 = scmp.ge.s32.totalorder %s6529_s30, 2  ;;  %s4333_s21 = sand.u32 1, %s6530_s16  }
0x12f4   : > { %p6532_p2 = scmp.ne.s32.totalorder %s6531_s23, 0  ;;  %s4334_s19 = scalar_lea.sflag [#allocation4], %s4333_s21 }
0x12f6   : > { %p4937_p3 = pnand %p4956_p0, %p6532_p2 }
0x12f8   : > { %5384 = dma.done.wait (!%p4937_p3), %s4334_s19, 128  }
0x12f9   : > { %5386 = vsyncadd (!%p4937_p3), %s4334_s19, 4294967168  ;;  %s6533_s21 = sld [smem:[#allocation27_spill]]  ;;  %s6534_s0 = sld [smem:[#allocation24_spill]] }
0x12fa   : > { %s6535_s30 = sld [smem:[#allocation25_spill]]  ;;  %s6536_s20 = sld [smem:[#allocation28_spill]] }
0x12ff   : > { %p34_p4 = scmp.ge.s32.totalorder %s6533_s21, 4  }
0x1301   :  { %36 = sbr.rel (!%p34_p4) target bundleno = 19 (0x13), region = 170 }
0x1308   :  { %4339 = vsyncpa [#allocation3], 1 }
0x1309   :  { %4341 = vsyncpa [#allocation3 + $0x1], 1 }
0x130a   :  { %4342 = vsyncpa [#allocation6], 1 }
0x130b   :  { %4343 = vsyncpa [#allocation9], 1 }
0x130c   :  { %4344 = vsyncpa [#allocation12], 1 }
0x130d   :  { %4345 = vsyncpa [#allocation15], 1 }
0x130e   :  { %4346 = vsyncpa [#allocation4], 1 }
0x130f   :  { %4348 = vsyncpa [#allocation4 + $0x1], 1 }

</bundles_post_ra>
